<compile_context>
chip_gen: v5e
topology: v5e:2x2
jax: 0.10.0
libtpu: 0.0.40
codegen_flags: <defaults>
</compile_context>

<pallas_src>
import math
import numpy as np
import jax
import jax.numpy as jnp
from jax.experimental import pallas as pl
from jax.experimental.pallas import tpu as pltpu

N1, N2, N3 = 10, 10, 110
NF = N1 * N2            # 100 mapped-feature nodes -> predict input = NF + N3 = 210
S_SCALE = 0.8           # BLS 's'
RADIUS = 1
EPS = 1e-8


# ----------------------------- small helpers ------------------------------ #
def _round_up(x, m):
    return ((x + m - 1) // m) * m


def _choose_tile(m, cap=8192):
    """Pick a tile (multiple of 128, up to 8192) and the padded M it divides."""
    m_pad = _round_up(m, 512)
    for t in (8192, 4096, 2048, 1024, 512):
        if t <= cap and m_pad % t == 0:
            return t, m_pad
    return 512, m_pad


def _lcm(a, b):
    return a * b // math.gcd(a, b)


def _pick_group(bc, wl, wh):
    """Images-per-lane-row G so G*Wl and G*Wh are multiples of 128 (lane-dense)."""
    if wl % 128 == 0 and wh % 128 == 0:
        return 1                                    # realistic widths: no packing
    g = _lcm(128 // math.gcd(128, wl), 128 // math.gcd(128, wh))
    if g > 32:                                      # odd widths: fall back, accept masks
        g = max([1] + [d for d in range(1, bc + 1)
                       if bc % d == 0 and d * wl <= 256])
    return g


def _band_np(n, r):
    idx = np.arange(n)
    return (np.abs(idx[:, None] - idx[None, :]) <= r).astype(np.float32)


def _interp_np(n_out, n_in):
    # bilinear, align_corners=True interpolation matrix [n_out, n_in]
    scale = (n_in - 1) / (n_out - 1) if n_out > 1 else 0.0
    src = np.arange(n_out, dtype=np.float64)[:, None] * scale
    j = np.arange(n_in, dtype=np.float64)[None, :]
    return np.maximum(0.0, 1.0 - np.abs(src - j)).astype(np.float32)


def _to_gf_layout(x, g):
    # [BC, Hq, Wq] -> [BC//g, Hq, g*Wq]  (g images side by side along lanes)
    if g == 1:
        return x
    bc, hq, wq = x.shape
    ng = bc // g
    return x.reshape(ng, g, hq, wq).transpose(0, 2, 1, 3).reshape(ng, hq, g * wq)


def _from_gf_layout(y, g, bc):
    if g == 1:
        return y
    ng, hq, gw = y.shape
    wq = gw // g
    return y.reshape(ng, hq, g, wq).transpose(0, 2, 1, 3).reshape(bc, hq, wq)


# ----------------------- BLS stage 1: feature pass ------------------------ #
def bls_features(x_lr, params, M, M_pad, TK):
    inv_m = 1.0 / M
    inv_m1 = 1.0 / max(M - 1, 1)          # torch.std is unbiased (M-1)

    x_flat = x_lr.reshape(1, -1).astype(jnp.float32)
    if M_pad != M:
        x_flat = jnp.pad(x_flat, ((0, 0), (0, M_pad - M)))   # zero pad -> no-op in sums

    def kernel(x_ref, w1_ref, w1s_ref, b1_ref, pmin_ref, pmax_ref,
               why_ref, whb_ref, y_ref, t2_ref, acc_mm, acc_sx, acc_sx2):
        k = pl.program_id(0)

        @pl.when(k == 0)
        def _():
            acc_mm[...] = jnp.zeros_like(acc_mm)
            acc_sx[...] = jnp.zeros_like(acc_sx)
            acc_sx2[...] = jnp.zeros_like(acc_sx2)

        xt = x_ref[...]                                        # [1, TK] f32
        acc_mm[...] += jnp.dot(xt.astype(jnp.bfloat16), w1_ref[...],
                               preferred_element_type=jnp.float32)   # [1, NF]
        # per-lane partial sums (pure VPU; one cross-lane reduce in finalize)
        acc_sx[...] += xt
        acc_sx2[...] += xt * xt

        @pl.when(k == pl.num_programs(0) - 1)
        def _():
            sx = jnp.sum(acc_sx[...], axis=-1, keepdims=True)      # [1,1]
            sx2 = jnp.sum(acc_sx2[...], axis=-1, keepdims=True)
            meanv = sx * inv_m
            varv = (sx2 - meanv * sx) * inv_m1                      # unbiased var
            h_scale = jax.lax.rsqrt(jnp.maximum(varv, 1e-12))       # eps guard
            # h@W1 = (x@W1 - mean*colsum(W1))/std ; b1 = bias row of We
            y = (acc_mm[...] - meanv * w1s_ref[...]) * h_scale + b1_ref[...]
            y = (y - pmin_ref[...]) / (pmax_ref[...] - pmin_ref[...])
            t2 = jnp.dot(y, why_ref[...],
                         preferred_element_type=jnp.float32) + whb_ref[...]
            # reference: l2 = s / max(T2); T2 = tanh(T2 * l2)
            t2 = jnp.tanh(t2 * (S_SCALE / jnp.max(t2, axis=-1, keepdims=True)))
            y_ref[...] = y
            t2_ref[...] = t2

    y, t2 = pl.pallas_call(
        kernel,
        out_shape=(jax.ShapeDtypeStruct((1, NF), jnp.float32),
                   jax.ShapeDtypeStruct((1, N3), jnp.float32)),
        grid=(M_pad // TK,),
        in_specs=[
            pl.BlockSpec((1, TK), lambda k: (0, k)),
            pl.BlockSpec((TK, NF), lambda k: (k, 0)),
            pl.BlockSpec((1, NF), lambda k: (0, 0)),
            pl.BlockSpec((1, NF), lambda k: (0, 0)),
            pl.BlockSpec((1, NF), lambda k: (0, 0)),
            pl.BlockSpec((1, NF), lambda k: (0, 0)),
            pl.BlockSpec((NF, N3), lambda k: (0, 0)),
            pl.BlockSpec((1, N3), lambda k: (0, 0)),
        ],
        out_specs=(pl.BlockSpec((1, NF), lambda k: (0, 0)),
                   pl.BlockSpec((1, N3), lambda k: (0, 0))),
        scratch_shapes=[pltpu.VMEM((1, NF), jnp.float32),
                        pltpu.VMEM((1, TK), jnp.float32),
                        pltpu.VMEM((1, TK), jnp.float32)],
        compiler_params=pltpu.CompilerParams(
            dimension_semantics=("arbitrary",)),
    )(x_flat, params["W1"], params["w1s"], params["b1"], params["pmin"],
      params["pmax"], params["Why"], params["whb"])
    return y, t2


# ----------------------- BLS stage 2: predict pass ------------------------ #
def bls_predict(t3, params, M_pad, TM):
    def kernel(t3_ref, wp_ref, bp_ref, o_ref):
        o_ref[...] = (jnp.dot(t3_ref[...].astype(jnp.bfloat16), wp_ref[...],
                              preferred_element_type=jnp.float32) + bp_ref[...])

    return pl.pallas_call(
        kernel,
        out_shape=jax.ShapeDtypeStruct((1, M_pad), jnp.float32),
        grid=(M_pad // TM,),
        in_specs=[
            pl.BlockSpec((1, NF + N3), lambda k: (0, 0)),
            pl.BlockSpec((NF + N3, TM), lambda k: (0, k)),
            pl.BlockSpec((1, TM), lambda k: (0, k)),
        ],
        out_specs=pl.BlockSpec((1, TM), lambda k: (0, k)),
        compiler_params=pltpu.CompilerParams(
            dimension_semantics=("parallel",),
            vmem_limit_bytes=32 * 1024 * 1024),
    )(t3, params["Wp"], params["bp"])


# ------------------------ FastGuidedFilter kernel -------------------------- #
def _gf_kernel(xl_ref, mp_ref, xh_ref, invn_ref, ml_ref, mr_ref,
               bh_ref, uh_ref, uwt_ref, o_ref):
    x = xl_ref[0]                        # [Hl, GWl]  low-res guide (G images)
    y = mp_ref[0]                        # [Hl, GWl]  BLS maps
    hr = xh_ref[0]                       # [Hh, GWh]  high-res guide
    inv_n = invn_ref[...]                # [Hl, GWl]  1 / box pixel count
    mL = ml_ref[...]                     # [1, 4*GWl] left-neighbor valid mask
    mR = mr_ref[...]                     # [1, 4*GWl] right-neighbor valid mask
    BH = bh_ref[...]                     # [Hl, Hl]   height band (resident)
    UH = uh_ref[...]                     # [Hh, Hl]   bilinear rows
    UWT = uwt_ref[...]                   # [GWl, GWh] block-diag bilinear^T

    gwl = x.shape[-1]

    # one batched height-box matmul for [x, y, x*y, x*x]
    slab = jnp.concatenate([x, y, x * y, x * x], axis=-1)        # [Hl, 4*GWl]
    th = jnp.dot(BH, slab, preferred_element_type=jnp.float32)
    # radius-1 width box as masked 3-tap lane sum (XLU rolls; no [GWl,GWl] matmul)
    w4 = th.shape[-1]
    boxed = (th
             + pltpu.roll(th, shift=1, axis=1) * mL
             + pltpu.roll(th, shift=w4 - 1, axis=1) * mR)

    mean_x = boxed[:, 0 * gwl:1 * gwl] * inv_n
    mean_y = boxed[:, 1 * gwl:2 * gwl] * inv_n
    cov_xy = boxed[:, 2 * gwl:3 * gwl] * inv_n - mean_x * mean_y
    var_x = boxed[:, 3 * gwl:4 * gwl] * inv_n - mean_x * mean_x

    A = cov_xy / (var_x + EPS)           # exact division (matches reference eps)
    b = mean_y - A * mean_x

    # batched height upsample for [A | b], then per-slab width upsample
    ab = jnp.concatenate([A, b], axis=-1)                          # [Hl, 2*GWl]
    ab_h = jnp.dot(UH, ab, preferred_element_type=jnp.float32)     # [Hh, 2*GWl]
    A_up = jnp.dot(ab_h[:, :gwl], UWT, preferred_element_type=jnp.float32)
    b_up = jnp.dot(ab_h[:, gwl:], UWT, preferred_element_type=jnp.float32)

    o_ref[0] = jnp.clip(A_up * hr + b_up, 0.0, 1.0)


def fast_guided_filter(x_lr, maps, x_hr):
    B, C, Hl, Wl = x_lr.shape
    _, _, Hh, Wh = x_hr.shape
    BC = B * C
    G = _pick_group(BC, Wl, Wh)
    BCp = _round_up(BC, G)               # pad with dummy images -> lane-dense tiles
    NG = BCp // G
    GWl, GWh = G * Wl, G * Wh

    def prep(a, hq, wq):
        a = a.reshape(BC, hq, wq).astype(jnp.float32)
        if BCp != BC:
            a = jnp.pad(a, ((0, BCp - BC), (0, 0), (0, 0)))
        return _to_gf_layout(a, G)

    xl = prep(x_lr, Hl, Wl)
    mp = prep(maps, Hl, Wl)
    xh = prep(x_hr, Hh, Wh)

    # --- grid-invariant constants, built once on host, resident in VMEM ---
    cH = (np.minimum(np.arange(Hl) + RADIUS, Hl - 1)
          - np.maximum(np.arange(Hl) - RADIUS, 0) + 1).astype(np.float32)
    cW = (np.minimum(np.arange(Wl) + RADIUS, Wl - 1)
          - np.maximum(np.arange(Wl) - RADIUS, 0) + 1).astype(np.float32)
    inv_n = np.tile(1.0 / (cH[:, None] * cW[None, :]), (1, G)).astype(np.float32)
    BH = _band_np(Hl, RADIUS)
    UH = _interp_np(Hh, Hl)
    UWT = np.kron(np.eye(G, dtype=np.float32), _interp_np(Wh, Wl).T)
    col = np.arange(Wl)
    mL = np.tile((col != 0).astype(np.float32), 4 * G)[None, :]       # [1, 4*GWl]
    mR = np.tile((col != Wl - 1).astype(np.float32), 4 * G)[None, :]

    out = pl.pallas_call(
        _gf_kernel,
        out_shape=jax.ShapeDtypeStruct((NG, Hh, GWh), jnp.float32),
        grid=(NG,),
        in_specs=[
            pl.BlockSpec((1, Hl, GWl), lambda g: (g, 0, 0)),
            pl.BlockSpec((1, Hl, GWl), lambda g: (g, 0, 0)),
            pl.BlockSpec((1, Hh, GWh), lambda g: (g, 0, 0)),
            pl.BlockSpec((Hl, GWl), lambda g: (0, 0)),
            pl.BlockSpec((1, 4 * GWl), lambda g: (0, 0)),
            pl.BlockSpec((1, 4 * GWl), lambda g: (0, 0)),
            pl.BlockSpec((Hl, Hl), lambda g: (0, 0)),
            pl.BlockSpec((Hh, Hl), lambda g: (0, 0)),
            pl.BlockSpec((GWl, GWh), lambda g: (0, 0)),
        ],
        out_specs=pl.BlockSpec((1, Hh, GWh), lambda g: (g, 0, 0)),
        compiler_params=pltpu.CompilerParams(
            dimension_semantics=("parallel",),
            vmem_limit_bytes=32 * 1024 * 1024),
    )(xl, mp, xh, jnp.asarray(inv_n), jnp.asarray(mL), jnp.asarray(mR),
      jnp.asarray(BH), jnp.asarray(UH), jnp.asarray(UWT))

    out = _from_gf_layout(out, G, BCp)[:BC]
    return out.reshape(B, C, Hh, Wh)


# ------------------------------ full module -------------------------------- #
def broad_guided_filter(x_lr, x_hr, params):
    B, C, Hl, Wl = x_lr.shape
    M = B * C * Hl * Wl
    TK, M_pad = _choose_tile(M)
    y, t2 = bls_features(x_lr, params, M, M_pad, TK)          # reduction pass
    t3 = jnp.concatenate([y, t2], axis=-1)                    # [1, 210]
    maps = bls_predict(t3, params, M_pad, TK)[:, :M]          # [1, M]
    maps = maps.reshape(B, C, Hl, Wl)                         # bl_lr(x).view(x.size())
    return fast_guided_filter(x_lr, maps, x_hr)               # clamp(0,1) in-kernel


def init_params(key, M):
    # Deterministic stand-ins for BLS.generate_nodes products:
    #   We (N2, M+1, N1) -> W1 [M_pad, NF] (bf16, zero-padded rows) + b1 [1, NF]
    #   colsum(W1)       -> w1s [1, NF]   (weight-only constant, precomputed)
    #   ps               -> pmin/pmax [1, NF]
    #   Wh (NF+1, N3)    -> Why [NF, N3] + whb [1, N3]
    #   predict Linear(NF+N3, M) -> Wp [NF+N3, M_pad] (bf16, zero-padded cols) + bp
    _, M_pad = _choose_tile(M)
    k1, k2, k3, k4, k5, k6 = jax.random.split(key, 6)

    w1 = jax.random.normal(k1, (M, NF), jnp.float32) * 0.05
    w1 = jnp.pad(w1, ((0, M_pad - M), (0, 0)))
    w1_bf16 = w1.astype(jnp.bfloat16)

    wp = jax.random.normal(k5, (NF + N3, M), jnp.float32) * 0.05
    wp = jnp.pad(wp, ((0, 0), (0, M_pad - M)))
    bp = jax.random.normal(k6, (1, M), jnp.float32) * 0.05
    bp = jnp.pad(bp, ((0, 0), (0, M_pad - M)))

    return {
        "W1": w1_bf16,
        "w1s": jnp.sum(w1_bf16.astype(jnp.float32), axis=0, keepdims=True),
        "b1": jax.random.normal(k2, (1, NF), jnp.float32) * 0.05,
        "pmin": jnp.full((1, NF), -1.0, jnp.float32),
        "pmax": jnp.full((1, NF), 1.0, jnp.float32),
        "Why": jax.random.normal(k3, (NF, N3), jnp.float32) * 0.1,
        "whb": jax.random.normal(k4, (1, N3), jnp.float32) * 0.1,
        "Wp": wp.astype(jnp.bfloat16),
        "bp": bp,
    }


if __name__ == "__main__":
    key = jax.random.PRNGKey(0)
    k_lr, k_hr, k_params = jax.random.split(key, 3)

    B, C, Hl, Wl = 2, 3, 16, 16
    Hh, Wh = 32, 32
    x_lr = jax.random.uniform(k_lr, (B, C, Hl, Wl), jnp.float32)
    x_hr = jax.random.uniform(k_hr, (B, C, Hh, Wh), jnp.float32)

    params = init_params(k_params, B * C * Hl * Wl)

    fwd = jax.jit(broad_guided_filter)
    out = fwd(x_lr, x_hr, params)
    out = jax.block_until_ready(out)
    assert out.shape == (B, C, Hh, Wh)
    assert bool(jnp.all(jnp.isfinite(out)))
    assert bool(jnp.all((out >= 0.0) & (out <= 1.0)))
    print("KERNEL_OK")
</pallas_src>

<mosaic_0001>
module attributes {stable_mosaic.version = 11 : i64} {
  func.func @kernel(%arg0: i32, %arg1: memref<1x512xf32, #tpu.memory_space<vmem>>, %arg2: memref<512x100xbf16, #tpu.memory_space<vmem>>, %arg3: memref<1x100xf32, #tpu.memory_space<vmem>>, %arg4: memref<1x100xf32, #tpu.memory_space<vmem>>, %arg5: memref<1x100xf32, #tpu.memory_space<vmem>>, %arg6: memref<1x100xf32, #tpu.memory_space<vmem>>, %arg7: memref<100x110xf32, #tpu.memory_space<vmem>>, %arg8: memref<1x110xf32, #tpu.memory_space<vmem>>, %arg9: memref<1x100xf32, #tpu.memory_space<vmem>>, %arg10: memref<1x110xf32, #tpu.memory_space<vmem>>, %arg11: memref<1x100xf32, #tpu.memory_space<vmem>>, %arg12: memref<1x512xf32, #tpu.memory_space<vmem>>, %arg13: memref<1x512xf32, #tpu.memory_space<vmem>>) attributes {dimension_semantics = [#tpu.dimension_semantics<arbitrary>], iteration_bounds = array<i64: 3>, scalar_prefetch = 0 : i64, scratch_operands = 3 : i64, tpu.core_type = #tpu.core_type<tc>, window_params = [{transform_indices = @transform_0, window_bounds = array<i64: 1, 512>}, {transform_indices = @transform_1, window_bounds = array<i64: 512, 100>}, {pipeline_mode = #tpu.pipeline_mode<synchronous>, transform_indices = @transform_2, window_bounds = array<i64: 1, 100>}, {pipeline_mode = #tpu.pipeline_mode<synchronous>, transform_indices = @transform_3, window_bounds = array<i64: 1, 100>}, {pipeline_mode = #tpu.pipeline_mode<synchronous>, transform_indices = @transform_4, window_bounds = array<i64: 1, 100>}, {pipeline_mode = #tpu.pipeline_mode<synchronous>, transform_indices = @transform_5, window_bounds = array<i64: 1, 100>}, {pipeline_mode = #tpu.pipeline_mode<synchronous>, transform_indices = @transform_6, window_bounds = array<i64: 100, 110>}, {pipeline_mode = #tpu.pipeline_mode<synchronous>, transform_indices = @transform_7, window_bounds = array<i64: 1, 110>}, {pipeline_mode = #tpu.pipeline_mode<synchronous>, transform_indices = @transform_8, window_bounds = array<i64: 1, 100>}, {pipeline_mode = #tpu.pipeline_mode<synchronous>, transform_indices = @transform_9, window_bounds = array<i64: 1, 110>}]} {
    %c0_i32 = arith.constant 0 : i32
    %0 = arith.cmpi eq, %arg0, %c0_i32 : i32
    %1 = arith.extui %0 : i1 to i32
    %c0_i32_0 = arith.constant 0 : i32
    %2 = arith.cmpi ne, %1, %c0_i32_0 : i32
    scf.if %2 {
      %cst_17 = arith.constant 0.000000e+00 : f32
      %20 = vector.broadcast %cst_17 : f32 to vector<1x100xf32>
      %c0_18 = arith.constant 0 : index
      %c0_19 = arith.constant 0 : index
      %21 = vector.load %arg11[%c0_18, %c0_19] : memref<1x100xf32, #tpu.memory_space<vmem>>, vector<1x100xf32>
      tpu.vector_store %arg11[%c0_18, %c0_19], %20 {strides = array<i32>} : memref<1x100xf32, #tpu.memory_space<vmem>>, vector<1x100xf32>,
      %cst_20 = arith.constant 0.000000e+00 : f32
      %22 = vector.broadcast %cst_20 : f32 to vector<1x512xf32>
      %c0_21 = arith.constant 0 : index
      %c0_22 = arith.constant 0 : index
      %23 = vector.load %arg12[%c0_21, %c0_22] : memref<1x512xf32, #tpu.memory_space<vmem>>, vector<1x512xf32>
      tpu.vector_store %arg12[%c0_21, %c0_22], %22 {strides = array<i32>} : memref<1x512xf32, #tpu.memory_space<vmem>>, vector<1x512xf32>,
      %cst_23 = arith.constant 0.000000e+00 : f32
      %24 = vector.broadcast %cst_23 : f32 to vector<1x512xf32>
      %c0_24 = arith.constant 0 : index
      %c0_25 = arith.constant 0 : index
      %25 = vector.load %arg13[%c0_24, %c0_25] : memref<1x512xf32, #tpu.memory_space<vmem>>, vector<1x512xf32>
      tpu.vector_store %arg13[%c0_24, %c0_25], %24 {strides = array<i32>} : memref<1x512xf32, #tpu.memory_space<vmem>>, vector<1x512xf32>,
    } else {
    }
    %c0 = arith.constant 0 : index
    %c0_1 = arith.constant 0 : index
    %3 = vector.load %arg1[%c0, %c0_1] : memref<1x512xf32, #tpu.memory_space<vmem>>, vector<1x512xf32>
    %c0_2 = arith.constant 0 : index
    %c0_3 = arith.constant 0 : index
    %4 = vector.load %arg11[%c0_2, %c0_3] : memref<1x100xf32, #tpu.memory_space<vmem>>, vector<1x100xf32>
    %5 = arith.truncf %3 : vector<1x512xf32> to vector<1x512xbf16>
    %c0_4 = arith.constant 0 : index
    %c0_5 = arith.constant 0 : index
    %6 = vector.load %arg2[%c0_4, %c0_5] : memref<512x100xbf16, #tpu.memory_space<vmem>>, vector<512x100xbf16>
    %cst = arith.constant dense<0.000000e+00> : vector<1x100xf32>
    %7 = tpu.matmul %5, %6, %cst {dimension_numbers = #tpu.dot_dimension_numbers<[1], [0], [0], [1], [0, 0, 1, 1], [], []>} : vector<1x512xbf16>, vector<512x100xbf16>, vector<1x100xf32> -> vector<1x100xf32>
    %8 = arith.addf %4, %7 : vector<1x100xf32>
    %c0_6 = arith.constant 0 : index
    %c0_7 = arith.constant 0 : index
    %9 = vector.load %arg11[%c0_6, %c0_7] : memref<1x100xf32, #tpu.memory_space<vmem>>, vector<1x100xf32>
    tpu.vector_store %arg11[%c0_6, %c0_7], %8 {strides = array<i32>} : memref<1x100xf32, #tpu.memory_space<vmem>>, vector<1x100xf32>,
    %c0_8 = arith.constant 0 : index
    %c0_9 = arith.constant 0 : index
    %10 = vector.load %arg12[%c0_8, %c0_9] : memref<1x512xf32, #tpu.memory_space<vmem>>, vector<1x512xf32>
    %11 = arith.addf %10, %3 : vector<1x512xf32>
    %c0_10 = arith.constant 0 : index
    %c0_11 = arith.constant 0 : index
    %12 = vector.load %arg12[%c0_10, %c0_11] : memref<1x512xf32, #tpu.memory_space<vmem>>, vector<1x512xf32>
    tpu.vector_store %arg12[%c0_10, %c0_11], %11 {strides = array<i32>} : memref<1x512xf32, #tpu.memory_space<vmem>>, vector<1x512xf32>,
    %c0_12 = arith.constant 0 : index
    %c0_13 = arith.constant 0 : index
    %13 = vector.load %arg13[%c0_12, %c0_13] : memref<1x512xf32, #tpu.memory_space<vmem>>, vector<1x512xf32>
    %14 = arith.mulf %3, %3 : vector<1x512xf32>
    %15 = arith.addf %13, %14 : vector<1x512xf32>
    %c0_14 = arith.constant 0 : index
    %c0_15 = arith.constant 0 : index
    %16 = vector.load %arg13[%c0_14, %c0_15] : memref<1x512xf32, #tpu.memory_space<vmem>>, vector<1x512xf32>
    tpu.vector_store %arg13[%c0_14, %c0_15], %15 {strides = array<i32>} : memref<1x512xf32, #tpu.memory_space<vmem>>, vector<1x512xf32>,
    %c2_i32 = arith.constant 2 : i32
    %17 = arith.cmpi eq, %arg0, %c2_i32 : i32
    %18 = arith.extui %17 : i1 to i32
    %c0_i32_16 = arith.constant 0 : i32
    %19 = arith.cmpi ne, %18, %c0_i32_16 : i32
    scf.if %19 {
      %c0_17 = arith.constant 0 : index
      %c0_18 = arith.constant 0 : index
      %20 = vector.load %arg12[%c0_17, %c0_18] : memref<1x512xf32, #tpu.memory_space<vmem>>, vector<1x512xf32>
      %cst_19 = arith.constant dense<0.000000e+00> : vector<1xf32>
      %21 = vector.multi_reduction <add>, %20, %cst_19 [1] : vector<1x512xf32> to vector<1xf32>
      %22 = vector.shape_cast %21 : vector<1xf32> to vector<1x1xf32>
      %c0_20 = arith.constant 0 : index
      %c0_21 = arith.constant 0 : index
      %23 = vector.load %arg13[%c0_20, %c0_21] : memref<1x512xf32, #tpu.memory_space<vmem>>, vector<1x512xf32>
      %cst_22 = arith.constant dense<0.000000e+00> : vector<1xf32>
      %24 = vector.multi_reduction <add>, %23, %cst_22 [1] : vector<1x512xf32> to vector<1xf32>
      %25 = vector.shape_cast %24 : vector<1xf32> to vector<1x1xf32>
      %cst_23 = arith.constant 6.51041686E-4 : f32
      %26 = vector.broadcast %cst_23 : f32 to vector<1x1xf32>
      %27 = arith.mulf %22, %26 : vector<1x1xf32>
      %28 = arith.mulf %27, %22 : vector<1x1xf32>
      %29 = arith.subf %25, %28 : vector<1x1xf32>
      %cst_24 = arith.constant 6.51465787E-4 : f32
      %30 = vector.broadcast %cst_24 : f32 to vector<1x1xf32>
      %31 = arith.mulf %29, %30 : vector<1x1xf32>
      %cst_25 = arith.constant 9.99999996E-13 : f32
      %32 = vector.broadcast %cst_25 : f32 to vector<1x1xf32>
      %33 = arith.maximumf %31, %32 : vector<1x1xf32>
      %34 = math.rsqrt %33 : vector<1x1xf32>
      %c0_26 = arith.constant 0 : index
      %c0_27 = arith.constant 0 : index
      %35 = vector.load %arg11[%c0_26, %c0_27] : memref<1x100xf32, #tpu.memory_space<vmem>>, vector<1x100xf32>
      %c0_28 = arith.constant 0 : index
      %c0_29 = arith.constant 0 : index
      %36 = vector.load %arg3[%c0_28, %c0_29] : memref<1x100xf32, #tpu.memory_space<vmem>>, vector<1x100xf32>
      %37 = vector.broadcast %27 : vector<1x1xf32> to vector<1x100xf32>
      %38 = arith.mulf %37, %36 : vector<1x100xf32>
      %39 = arith.subf %35, %38 : vector<1x100xf32>
      %40 = vector.broadcast %34 : vector<1x1xf32> to vector<1x100xf32>
      %41 = arith.mulf %39, %40 : vector<1x100xf32>
      %c0_30 = arith.constant 0 : index
      %c0_31 = arith.constant 0 : index
      %42 = vector.load %arg4[%c0_30, %c0_31] : memref<1x100xf32, #tpu.memory_space<vmem>>, vector<1x100xf32>
      %43 = arith.addf %41, %42 : vector<1x100xf32>
      %c0_32 = arith.constant 0 : index
      %c0_33 = arith.constant 0 : index
      %44 = vector.load %arg5[%c0_32, %c0_33] : memref<1x100xf32, #tpu.memory_space<vmem>>, vector<1x100xf32>
      %45 = arith.subf %43, %44 : vector<1x100xf32>
      %c0_34 = arith.constant 0 : index
      %c0_35 = arith.constant 0 : index
      %46 = vector.load %arg6[%c0_34, %c0_35] : memref<1x100xf32, #tpu.memory_space<vmem>>, vector<1x100xf32>
      %c0_36 = arith.constant 0 : index
      %c0_37 = arith.constant 0 : index
      %47 = vector.load %arg5[%c0_36, %c0_37] : memref<1x100xf32, #tpu.memory_space<vmem>>, vector<1x100xf32>
      %48 = arith.subf %46, %47 : vector<1x100xf32>
      %49 = arith.divf %45, %48 : vector<1x100xf32>
      %c0_38 = arith.constant 0 : index
      %c0_39 = arith.constant 0 : index
      %50 = vector.load %arg7[%c0_38, %c0_39] : memref<100x110xf32, #tpu.memory_space<vmem>>, vector<100x110xf32>
      %cst_40 = arith.constant dense<0.000000e+00> : vector<1x110xf32>
      %51 = tpu.matmul %49, %50, %cst_40 {dimension_numbers = #tpu.dot_dimension_numbers<[1], [0], [0], [1], [0, 0, 1, 1], [], []>} : vector<1x100xf32>, vector<100x110xf32>, vector<1x110xf32> -> vector<1x110xf32>
      %c0_41 = arith.constant 0 : index
      %c0_42 = arith.constant 0 : index
      %52 = vector.load %arg8[%c0_41, %c0_42] : memref<1x110xf32, #tpu.memory_space<vmem>>, vector<1x110xf32>
      %53 = arith.addf %51, %52 : vector<1x110xf32>
      %cst_43 = arith.constant dense<0xFF800000> : vector<1xf32>
      %54 = vector.multi_reduction <maximumf>, %53, %cst_43 [1] : vector<1x110xf32> to vector<1xf32>
      %55 = vector.shape_cast %54 : vector<1xf32> to vector<1x1xf32>
      %cst_44 = arith.constant 8.000000e-01 : f32
      %56 = vector.broadcast %cst_44 : f32 to vector<1x1xf32>
      %57 = arith.divf %56, %55 : vector<1x1xf32>
      %58 = vector.broadcast %57 : vector<1x1xf32> to vector<1x110xf32>
      %59 = arith.mulf %53, %58 : vector<1x110xf32>
      %60 = math.tanh %59 : vector<1x110xf32>
      %c0_45 = arith.constant 0 : index
      %c0_46 = arith.constant 0 : index
      %61 = vector.load %arg9[%c0_45, %c0_46] : memref<1x100xf32, #tpu.memory_space<vmem>>, vector<1x100xf32>
      tpu.vector_store %arg9[%c0_45, %c0_46], %49 {strides = array<i32>} : memref<1x100xf32, #tpu.memory_space<vmem>>, vector<1x100xf32>,
      %c0_47 = arith.constant 0 : index
      %c0_48 = arith.constant 0 : index
      %62 = vector.load %arg10[%c0_47, %c0_48] : memref<1x110xf32, #tpu.memory_space<vmem>>, vector<1x110xf32>
      tpu.vector_store %arg10[%c0_47, %c0_48], %60 {strides = array<i32>} : memref<1x110xf32, #tpu.memory_space<vmem>>, vector<1x110xf32>,
    } else {
    }
    return
  }
  func.func @transform_0(%arg0: i32) -> (i32, i32) {
    %c0_i32 = arith.constant 0 : i32
    %c0_i32_0 = arith.constant 0 : i32
    return %c0_i32, %arg0 : i32, i32
  }
  func.func @transform_1(%arg0: i32) -> (i32, i32) {
    %c0_i32 = arith.constant 0 : i32
    %c0_i32_0 = arith.constant 0 : i32
    return %arg0, %c0_i32 : i32, i32
  }
  func.func @transform_2(%arg0: i32) -> (i32, i32) {
    %c0_i32 = arith.constant 0 : i32
    %c0_i32_0 = arith.constant 0 : i32
    %c0_i32_1 = arith.constant 0 : i32
    return %c0_i32, %c0_i32_0 : i32, i32
  }
  func.func @transform_3(%arg0: i32) -> (i32, i32) {
    %c0_i32 = arith.constant 0 : i32
    %c0_i32_0 = arith.constant 0 : i32
    %c0_i32_1 = arith.constant 0 : i32
    return %c0_i32, %c0_i32_0 : i32, i32
  }
  func.func @transform_4(%arg0: i32) -> (i32, i32) {
    %c0_i32 = arith.constant 0 : i32
    %c0_i32_0 = arith.constant 0 : i32
    %c0_i32_1 = arith.constant 0 : i32
    return %c0_i32, %c0_i32_0 : i32, i32
  }
  func.func @transform_5(%arg0: i32) -> (i32, i32) {
    %c0_i32 = arith.constant 0 : i32
    %c0_i32_0 = arith.constant 0 : i32
    %c0_i32_1 = arith.constant 0 : i32
    return %c0_i32, %c0_i32_0 : i32, i32
  }
  func.func @transform_6(%arg0: i32) -> (i32, i32) {
    %c0_i32 = arith.constant 0 : i32
    %c0_i32_0 = arith.constant 0 : i32
    %c0_i32_1 = arith.constant 0 : i32
    return %c0_i32, %c0_i32_0 : i32, i32
  }
  func.func @transform_7(%arg0: i32) -> (i32, i32) {
    %c0_i32 = arith.constant 0 : i32
    %c0_i32_0 = arith.constant 0 : i32
    %c0_i32_1 = arith.constant 0 : i32
    return %c0_i32, %c0_i32_0 : i32, i32
  }
  func.func @transform_8(%arg0: i32) -> (i32, i32) {
    %c0_i32 = arith.constant 0 : i32
    %c0_i32_0 = arith.constant 0 : i32
    %c0_i32_1 = arith.constant 0 : i32
    return %c0_i32, %c0_i32_0 : i32, i32
  }
  func.func @transform_9(%arg0: i32) -> (i32, i32) {
    %c0_i32 = arith.constant 0 : i32
    %c0_i32_0 = arith.constant 0 : i32
    %c0_i32_1 = arith.constant 0 : i32
    return %c0_i32, %c0_i32_0 : i32, i32
  }
}

module attributes {stable_mosaic.version = 11 : i64} {
  func.func @kernel(%arg0: i32, %arg1: memref<1x210xf32, #tpu.memory_space<vmem>>, %arg2: memref<210x512xbf16, #tpu.memory_space<vmem>>, %arg3: memref<1x512xf32, #tpu.memory_space<vmem>>, %arg4: memref<1x512xf32, #tpu.memory_space<vmem>>) attributes {dimension_semantics = [#tpu.dimension_semantics<parallel>], iteration_bounds = array<i64: 3>, scalar_prefetch = 0 : i64, scratch_operands = 0 : i64, tpu.core_type = #tpu.core_type<tc>, window_params = [{pipeline_mode = #tpu.pipeline_mode<synchronous>, transform_indices = @transform_0, window_bounds = array<i64: 1, 210>}, {transform_indices = @transform_1, window_bounds = array<i64: 210, 512>}, {transform_indices = @transform_2, window_bounds = array<i64: 1, 512>}, {transform_indices = @transform_3, window_bounds = array<i64: 1, 512>}]} {
    %c0 = arith.constant 0 : index
    %c0_0 = arith.constant 0 : index
    %0 = vector.load %arg1[%c0, %c0_0] : memref<1x210xf32, #tpu.memory_space<vmem>>, vector<1x210xf32>
    %1 = arith.truncf %0 : vector<1x210xf32> to vector<1x210xbf16>
    %c0_1 = arith.constant 0 : index
    %c0_2 = arith.constant 0 : index
    %2 = vector.load %arg2[%c0_1, %c0_2] : memref<210x512xbf16, #tpu.memory_space<vmem>>, vector<210x512xbf16>
    %cst = arith.constant dense<0.000000e+00> : vector<1x512xf32>
    %3 = tpu.matmul %1, %2, %cst {dimension_numbers = #tpu.dot_dimension_numbers<[1], [0], [0], [1], [0, 0, 1, 1], [], []>} : vector<1x210xbf16>, vector<210x512xbf16>, vector<1x512xf32> -> vector<1x512xf32>
    %c0_3 = arith.constant 0 : index
    %c0_4 = arith.constant 0 : index
    %4 = vector.load %arg3[%c0_3, %c0_4] : memref<1x512xf32, #tpu.memory_space<vmem>>, vector<1x512xf32>
    %5 = arith.addf %3, %4 : vector<1x512xf32>
    %c0_5 = arith.constant 0 : index
    %c0_6 = arith.constant 0 : index
    %6 = vector.load %arg4[%c0_5, %c0_6] : memref<1x512xf32, #tpu.memory_space<vmem>>, vector<1x512xf32>
    tpu.vector_store %arg4[%c0_5, %c0_6], %5 {strides = array<i32>} : memref<1x512xf32, #tpu.memory_space<vmem>>, vector<1x512xf32>,
    return
  }
  func.func @transform_0(%arg0: i32) -> (i32, i32) {
    %c0_i32 = arith.constant 0 : i32
    %c0_i32_0 = arith.constant 0 : i32
    %c0_i32_1 = arith.constant 0 : i32
    return %c0_i32, %c0_i32_0 : i32, i32
  }
  func.func @transform_1(%arg0: i32) -> (i32, i32) {
    %c0_i32 = arith.constant 0 : i32
    %c0_i32_0 = arith.constant 0 : i32
    return %c0_i32, %arg0 : i32, i32
  }
  func.func @transform_2(%arg0: i32) -> (i32, i32) {
    %c0_i32 = arith.constant 0 : i32
    %c0_i32_0 = arith.constant 0 : i32
    return %c0_i32, %arg0 : i32, i32
  }
  func.func @transform_3(%arg0: i32) -> (i32, i32) {
    %c0_i32 = arith.constant 0 : i32
    %c0_i32_0 = arith.constant 0 : i32
    return %c0_i32, %arg0 : i32, i32
  }
}

module attributes {stable_mosaic.version = 11 : i64} {
  func.func @_gf_kernel(%arg0: i32, %arg1: memref<1x16x128xf32, #tpu.memory_space<vmem>>, %arg2: memref<1x16x128xf32, #tpu.memory_space<vmem>>, %arg3: memref<1x32x256xf32, #tpu.memory_space<vmem>>, %arg4: memref<16x128xf32, #tpu.memory_space<vmem>>, %arg5: memref<1x512xf32, #tpu.memory_space<vmem>>, %arg6: memref<1x512xf32, #tpu.memory_space<vmem>>, %arg7: memref<16x16xf32, #tpu.memory_space<vmem>>, %arg8: memref<32x16xf32, #tpu.memory_space<vmem>>, %arg9: memref<128x256xf32, #tpu.memory_space<vmem>>, %arg10: memref<1x32x256xf32, #tpu.memory_space<vmem>>) attributes {dimension_semantics = [#tpu.dimension_semantics<parallel>], iteration_bounds = array<i64: 1>, scalar_prefetch = 0 : i64, scratch_operands = 0 : i64, tpu.core_type = #tpu.core_type<tc>, window_params = [{transform_indices = @transform_0, window_bounds = array<i64: 1, 16, 128>}, {transform_indices = @transform_1, window_bounds = array<i64: 1, 16, 128>}, {transform_indices = @transform_2, window_bounds = array<i64: 1, 32, 256>}, {pipeline_mode = #tpu.pipeline_mode<synchronous>, transform_indices = @transform_3, window_bounds = array<i64: 16, 128>}, {pipeline_mode = #tpu.pipeline_mode<synchronous>, transform_indices = @transform_4, window_bounds = array<i64: 1, 512>}, {pipeline_mode = #tpu.pipeline_mode<synchronous>, transform_indices = @transform_5, window_bounds = array<i64: 1, 512>}, {pipeline_mode = #tpu.pipeline_mode<synchronous>, transform_indices = @transform_6, window_bounds = array<i64: 16, 16>}, {pipeline_mode = #tpu.pipeline_mode<synchronous>, transform_indices = @transform_7, window_bounds = array<i64: 32, 16>}, {pipeline_mode = #tpu.pipeline_mode<synchronous>, transform_indices = @transform_8, window_bounds = array<i64: 128, 256>}, {transform_indices = @transform_9, window_bounds = array<i64: 1, 32, 256>}]} {
    %c0 = arith.constant 0 : index
    %c0_0 = arith.constant 0 : index
    %c0_1 = arith.constant 0 : index
    %0 = vector.load %arg1[%c0, %c0_0, %c0_1] : memref<1x16x128xf32, #tpu.memory_space<vmem>>, vector<1x16x128xf32>
    %1 = vector.shape_cast %0 : vector<1x16x128xf32> to vector<16x128xf32>
    %c0_2 = arith.constant 0 : index
    %c0_3 = arith.constant 0 : index
    %c0_4 = arith.constant 0 : index
    %2 = vector.load %arg2[%c0_2, %c0_3, %c0_4] : memref<1x16x128xf32, #tpu.memory_space<vmem>>, vector<1x16x128xf32>
    %3 = vector.shape_cast %2 : vector<1x16x128xf32> to vector<16x128xf32>
    %c0_5 = arith.constant 0 : index
    %c0_6 = arith.constant 0 : index
    %c0_7 = arith.constant 0 : index
    %4 = vector.load %arg3[%c0_5, %c0_6, %c0_7] : memref<1x32x256xf32, #tpu.memory_space<vmem>>, vector<1x32x256xf32>
    %5 = vector.shape_cast %4 : vector<1x32x256xf32> to vector<32x256xf32>
    %c0_8 = arith.constant 0 : index
    %c0_9 = arith.constant 0 : index
    %6 = vector.load %arg4[%c0_8, %c0_9] : memref<16x128xf32, #tpu.memory_space<vmem>>, vector<16x128xf32>
    %c0_10 = arith.constant 0 : index
    %c0_11 = arith.constant 0 : index
    %7 = vector.load %arg5[%c0_10, %c0_11] : memref<1x512xf32, #tpu.memory_space<vmem>>, vector<1x512xf32>
    %c0_12 = arith.constant 0 : index
    %c0_13 = arith.constant 0 : index
    %8 = vector.load %arg6[%c0_12, %c0_13] : memref<1x512xf32, #tpu.memory_space<vmem>>, vector<1x512xf32>
    %c0_14 = arith.constant 0 : index
    %c0_15 = arith.constant 0 : index
    %9 = vector.load %arg7[%c0_14, %c0_15] : memref<16x16xf32, #tpu.memory_space<vmem>>, vector<16x16xf32>
    %c0_16 = arith.constant 0 : index
    %c0_17 = arith.constant 0 : index
    %10 = vector.load %arg8[%c0_16, %c0_17] : memref<32x16xf32, #tpu.memory_space<vmem>>, vector<32x16xf32>
    %c0_18 = arith.constant 0 : index
    %c0_19 = arith.constant 0 : index
    %11 = vector.load %arg9[%c0_18, %c0_19] : memref<128x256xf32, #tpu.memory_space<vmem>>, vector<128x256xf32>
    %12 = arith.mulf %1, %3 : vector<16x128xf32>
    %13 = arith.mulf %1, %1 : vector<16x128xf32>
    %14 = tpu.concatenate %1, %3, %12, %13 in 1 : vector<16x128xf32>, vector<16x128xf32>, vector<16x128xf32>, vector<16x128xf32> -> vector<16x512xf32>
    %cst = arith.constant dense<0.000000e+00> : vector<16x512xf32>
    %15 = tpu.matmul %9, %14, %cst {dimension_numbers = #tpu.dot_dimension_numbers<[1], [0], [0], [1], [0, 0, 1, 1], [], []>} : vector<16x16xf32>, vector<16x512xf32>, vector<16x512xf32> -> vector<16x512xf32>
    %c1_i32 = arith.constant 1 : i32
    %16 = tpu.dynamic_rotate %15 by %c1_i32 dim 1 : vector<16x512xf32>, i32 -> vector<16x512xf32>
    %17 = vector.broadcast %7 : vector<1x512xf32> to vector<16x512xf32>
    %18 = arith.mulf %16, %17 : vector<16x512xf32>
    %19 = arith.addf %15, %18 : vector<16x512xf32>
    %c511_i32 = arith.constant 511 : i32
    %20 = tpu.dynamic_rotate %15 by %c511_i32 dim 1 : vector<16x512xf32>, i32 -> vector<16x512xf32>
    %21 = vector.broadcast %8 : vector<1x512xf32> to vector<16x512xf32>
    %22 = arith.mulf %20, %21 : vector<16x512xf32>
    %23 = arith.addf %19, %22 : vector<16x512xf32>
    %24 = vector.extract_strided_slice %23 {offsets = [0, 0], sizes = [16, 128], strides = [1, 1]} : vector<16x512xf32> to vector<16x128xf32>
    %25 = arith.mulf %24, %6 : vector<16x128xf32>
    %26 = vector.extract_strided_slice %23 {offsets = [0, 128], sizes = [16, 128], strides = [1, 1]} : vector<16x512xf32> to vector<16x128xf32>
    %27 = arith.mulf %26, %6 : vector<16x128xf32>
    %28 = vector.extract_strided_slice %23 {offsets = [0, 256], sizes = [16, 128], strides = [1, 1]} : vector<16x512xf32> to vector<16x128xf32>
    %29 = arith.mulf %28, %6 : vector<16x128xf32>
    %30 = arith.mulf %25, %27 : vector<16x128xf32>
    %31 = arith.subf %29, %30 : vector<16x128xf32>
    %32 = vector.extract_strided_slice %23 {offsets = [0, 384], sizes = [16, 128], strides = [1, 1]} : vector<16x512xf32> to vector<16x128xf32>
    %33 = arith.mulf %32, %6 : vector<16x128xf32>
    %34 = arith.mulf %25, %25 : vector<16x128xf32>
    %35 = arith.subf %33, %34 : vector<16x128xf32>
    %cst_20 = arith.constant 9.99999993E-9 : f32
    %36 = vector.broadcast %cst_20 : f32 to vector<16x128xf32>
    %37 = arith.addf %35, %36 : vector<16x128xf32>
    %38 = arith.divf %31, %37 : vector<16x128xf32>
    %39 = arith.mulf %38, %25 : vector<16x128xf32>
    %40 = arith.subf %27, %39 : vector<16x128xf32>
    %41 = tpu.concatenate %38, %40 in 1 : vector<16x128xf32>, vector<16x128xf32> -> vector<16x256xf32>
    %cst_21 = arith.constant dense<0.000000e+00> : vector<32x256xf32>
    %42 = tpu.matmul %10, %41, %cst_21 {dimension_numbers = #tpu.dot_dimension_numbers<[1], [0], [0], [1], [0, 0, 1, 1], [], []>} : vector<32x16xf32>, vector<16x256xf32>, vector<32x256xf32> -> vector<32x256xf32>
    %43 = vector.extract_strided_slice %42 {offsets = [0, 0], sizes = [32, 128], strides = [1, 1]} : vector<32x256xf32> to vector<32x128xf32>
    %cst_22 = arith.constant dense<0.000000e+00> : vector<32x256xf32>
    %44 = tpu.matmul %43, %11, %cst_22 {dimension_numbers = #tpu.dot_dimension_numbers<[1], [0], [0], [1], [0, 0, 1, 1], [], []>} : vector<32x128xf32>, vector<128x256xf32>, vector<32x256xf32> -> vector<32x256xf32>
    %45 = vector.extract_strided_slice %42 {offsets = [0, 128], sizes = [32, 128], strides = [1, 1]} : vector<32x256xf32> to vector<32x128xf32>
    %cst_23 = arith.constant dense<0.000000e+00> : vector<32x256xf32>
    %46 = tpu.matmul %45, %11, %cst_23 {dimension_numbers = #tpu.dot_dimension_numbers<[1], [0], [0], [1], [0, 0, 1, 1], [], []>} : vector<32x128xf32>, vector<128x256xf32>, vector<32x256xf32> -> vector<32x256xf32>
    %47 = arith.mulf %44, %5 : vector<32x256xf32>
    %48 = arith.addf %47, %46 : vector<32x256xf32>
    %cst_24 = arith.constant 0.000000e+00 : f32
    %cst_25 = arith.constant 1.000000e+00 : f32
    %49 = vector.broadcast %cst_24 : f32 to vector<32x256xf32>
    %50 = arith.maximumf %49, %48 : vector<32x256xf32>
    %51 = vector.broadcast %cst_25 : f32 to vector<32x256xf32>
    %52 = arith.minimumf %51, %50 : vector<32x256xf32>
    %c0_26 = arith.constant 0 : index
    %c0_27 = arith.constant 0 : index
    %c0_28 = arith.constant 0 : index
    %53 = vector.load %arg10[%c0_26, %c0_27, %c0_28] : memref<1x32x256xf32, #tpu.memory_space<vmem>>, vector<1x32x256xf32>
    %54 = vector.shape_cast %53 : vector<1x32x256xf32> to vector<32x256xf32>
    %55 = vector.shape_cast %52 : vector<32x256xf32> to vector<1x32x256xf32>
    tpu.vector_store %arg10[%c0_26, %c0_27, %c0_28], %55 {strides = array<i32>} : memref<1x32x256xf32, #tpu.memory_space<vmem>>, vector<1x32x256xf32>,
    return
  }
  func.func @transform_0(%arg0: i32) -> (i32, i32, i32) {
    %c0_i32 = arith.constant 0 : i32
    %c0_i32_0 = arith.constant 0 : i32
    %c0_i32_1 = arith.constant 0 : i32
    return %arg0, %c0_i32, %c0_i32_0 : i32, i32, i32
  }
  func.func @transform_1(%arg0: i32) -> (i32, i32, i32) {
    %c0_i32 = arith.constant 0 : i32
    %c0_i32_0 = arith.constant 0 : i32
    %c0_i32_1 = arith.constant 0 : i32
    return %arg0, %c0_i32, %c0_i32_0 : i32, i32, i32
  }
  func.func @transform_2(%arg0: i32) -> (i32, i32, i32) {
    %c0_i32 = arith.constant 0 : i32
    %c0_i32_0 = arith.constant 0 : i32
    %c0_i32_1 = arith.constant 0 : i32
    return %arg0, %c0_i32, %c0_i32_0 : i32, i32, i32
  }
  func.func @transform_3(%arg0: i32) -> (i32, i32) {
    %c0_i32 = arith.constant 0 : i32
    %c0_i32_0 = arith.constant 0 : i32
    %c0_i32_1 = arith.constant 0 : i32
    return %c0_i32, %c0_i32_0 : i32, i32
  }
  func.func @transform_4(%arg0: i32) -> (i32, i32) {
    %c0_i32 = arith.constant 0 : i32
    %c0_i32_0 = arith.constant 0 : i32
    %c0_i32_1 = arith.constant 0 : i32
    return %c0_i32, %c0_i32_0 : i32, i32
  }
  func.func @transform_5(%arg0: i32) -> (i32, i32) {
    %c0_i32 = arith.constant 0 : i32
    %c0_i32_0 = arith.constant 0 : i32
    %c0_i32_1 = arith.constant 0 : i32
    return %c0_i32, %c0_i32_0 : i32, i32
  }
  func.func @transform_6(%arg0: i32) -> (i32, i32) {
    %c0_i32 = arith.constant 0 : i32
    %c0_i32_0 = arith.constant 0 : i32
    %c0_i32_1 = arith.constant 0 : i32
    return %c0_i32, %c0_i32_0 : i32, i32
  }
  func.func @transform_7(%arg0: i32) -> (i32, i32) {
    %c0_i32 = arith.constant 0 : i32
    %c0_i32_0 = arith.constant 0 : i32
    %c0_i32_1 = arith.constant 0 : i32
    return %c0_i32, %c0_i32_0 : i32, i32
  }
  func.func @transform_8(%arg0: i32) -> (i32, i32) {
    %c0_i32 = arith.constant 0 : i32
    %c0_i32_0 = arith.constant 0 : i32
    %c0_i32_1 = arith.constant 0 : i32
    return %c0_i32, %c0_i32_0 : i32, i32
  }
  func.func @transform_9(%arg0: i32) -> (i32, i32, i32) {
    %c0_i32 = arith.constant 0 : i32
    %c0_i32_0 = arith.constant 0 : i32
    %c0_i32_1 = arith.constant 0 : i32
    return %arg0, %c0_i32, %c0_i32_0 : i32, i32, i32
  }
}

</mosaic_0001>

<bundles_post_ra>
// kernel: broad_guided_filter.3
= control target key start
LH: loop header
LB: loop body
LE: loop exit
PB: predicated region body
PF: predicated region fallthrough
CT: control target
= control target key end

     0   :  { %s1127_s30 = smov 0   ;;  %s1264_s0 = inlined_call_operand.vmem [shape: f32[1,1536], index: 0, kind: input, shape index: {}]   ;;  %s1265_s1 = inlined_call_operand.vmem [shape: bf16[1536,100], index: 1, kind: input, shape index: {}]   ;;  %s1266_s2 = inlined_call_operand.vmem [shape: f32[1,100], index: 2, kind: input, shape index: {}]   ;;  %s1267_s3 = inlined_call_operand.vmem [shape: f32[1,100], index: 3, kind: input, shape index: {}]   ;;  %s1268_s4 = inlined_call_operand.vmem [shape: f32[1,100], index: 4, kind: input, shape index: {}]   ;;  %s1269_s5 = inlined_call_operand.vmem [shape: f32[1,100], index: 5, kind: input, shape index: {}]   ;;  %s1270_s6 = inlined_call_operand.vmem [shape: f32[100,110], index: 6, kind: input, shape index: {}]   ;;  %s1271_s7 = inlined_call_operand.vmem [shape: f32[1,110], index: 7, kind: input, shape index: {}]   ;;  %s1272_s8 = inlined_call_operand.vmem [shape: f32[1,100], index: 8, kind: output, shape index: {0}]   ;;  %s1273_s9 = inlined_call_operand.vmem [shape: f32[1,110], index: 9, kind: output, shape index: {1}]  }
   0x1 LB: > { %s1133_s10 = sadd.s32 4294967295, %s1074_s30   ;;  %p881_p0 = scmp.ge.s32.totalorder %s1074_s30, 1  ;;  %s1074_s30 = sphi %s1127_s30, %s20_s30  }
   0x2   : > { %p291_p1 = scmp.lt.s32.totalorder %s1074_s30, 4 }
   0x4   : > { %p292_p2 = pnand %p881_p0, %p291_p1 }
   0x5   : > { %s882_s11 = sshll.u32 (!%p292_p2), %s1133_s10, 2  ;;  %s883_s12 = sshll.u32 (!%p292_p2), %s1133_s10, 6 }
   0x6   : > { %295 = sbr.rel (%p292_p2) target bundleno = 638 (0x27e), region = 52  ;;  %p327_p3 = scmp.lt.s32.totalorder (!%p292_p2), %s882_s11, 11 }
   0x7   : > { %p332_p4 = scmp.lt.s32.totalorder (!%p292_p2), %s883_s12, 191  ;;  %p885_p5 = scmp.ne.s32.totalorder (!%p292_p2), %s1133_s10, 0 }
   0xb   : > { %s1275_s11 = smov (!%p327_p3, %s882_s11), 11  ;;  %s1277_s12 = smov (!%p332_p4, %s883_s12), 191 }
   0xc   : > { %s329_s15 = scalar_lea.vmem %s1264_s0, %s1275_s11  ;;  %s884_s16 = sshll.u32 %s1277_s12, 2 }
   0xd   : > { %s1148_s19 = scalar_lea.vmem %s1265_s1, %s884_s16  ;;  %340 = sbr.rel (%p885_p5) target bundleno = 23 (0x17), region = 56 }
  0x12   : > { %vm341_vm0 = vcmask 811008   ;;  %v343_v0 = vlaneseq  ;;  %v1076_v1 = vmov 0.0  }
  0x13   : > { %342 = vst.msk [vmem:[#allocation2] sm:$0x1] %vm341_vm0, %v1076_v1 }
  0x14   : > { %vm345_vm1 = vcmp.lt.s32.totalorder %v343_v0, 512 }
  0x15   : > { %347 = vst.msk [vmem:[#allocation3] sm:$0xf] %vm345_vm1, %v1076_v1 }
  0x16   : > { %348 = vst.msk [vmem:[#allocation4] sm:$0xf] %vm345_vm1, %v1076_v1 }
  0x17 PF: > { %v1026_v2 = vld [vmem:[%s1148_s19 + $0x38] sm:$0xff]  ;;  %v1025_v6 = vld [vmem:[%s1148_s19 + $0x30] sm:$0xff]  ;;  %v1024_v10 = vld [vmem:[%s1148_s19 + $0x28] sm:$0xff]  ;;  %v677_v14 = vlaneseq  ;;  %vm673_vm3 = vcmask 811008   ;;  %p1014_p6 = scmp.ne.s32.totalorder %s1133_s10, 2 }
  0x18   : > { %v1034_v3 = vld [vmem:[%s1148_s19 + $0x78] sm:$0xff]  ;;  %620 = vmatpush.bf16.msra.mxu0 %v1026_v2  ;;  %v1033_v7 = vld [vmem:[%s1148_s19 + $0x70] sm:$0xff]  ;;  %v1032_v11 = vld [vmem:[%s1148_s19 + $0x68] sm:$0xff] }
  0x19   : > { %v1042_v4 = vld [vmem:[%s1148_s19 + $0xb8] sm:$0xff]  ;;  %633 = vmatpush.bf16.msra.mxu1 %v1034_v3  ;;  %v1041_v8 = vld [vmem:[%s1148_s19 + $0xb0] sm:$0xff]  ;;  %v1040_v12 = vld [vmem:[%s1148_s19 + $0xa8] sm:$0xff]  ;;  %vm679_vm2 = vcmp.lt.s32.totalorder %v677_v14, 512 }
  0x1a   : > { %v1050_v5 = vld [vmem:[%s1148_s19 + $0xf8] sm:$0xff]  ;;  %646 = vmatpush.bf16.msra.mxu2 %v1042_v4  ;;  %v1049_v9 = vld [vmem:[%s1148_s19 + $0xf0] sm:$0xff]  ;;  %v1048_v13 = vld [vmem:[%s1148_s19 + $0xe8] sm:$0xff] }
  0x1b   : > { %659 = vmatpush.bf16.msra.mxu3 %v1050_v5  ;;  %v1023_v15 = vld [vmem:[%s1148_s19 + $0x20] sm:$0xff]  ;;  %v1022_v25 = vld [vmem:[%s1148_s19 + $0x18] sm:$0xff]  ;;  %v1021_v29 = vld [vmem:[%s1148_s19 + $0x10] sm:$0xff] }
  0x1c   : > { %621 = vmatpush.bf16.msra.mxu0 %v1025_v6  ;;  %v1031_v16 = vld [vmem:[%s1148_s19 + $0x60] sm:$0xff]  ;;  %v1030_v26 = vld [vmem:[%s1148_s19 + $0x58] sm:$0xff]  ;;  %v1029_v30 = vld [vmem:[%s1148_s19 + $0x50] sm:$0xff] }
  0x1d   : > { %634 = vmatpush.bf16.msra.mxu1 %v1033_v7  ;;  %v1039_v17 = vld [vmem:[%s1148_s19 + $0xa0] sm:$0xff]  ;;  %v1038_v27 = vld [vmem:[%s1148_s19 + $0x98] sm:$0xff]  ;;  %v1037_v31 = vld [vmem:[%s1148_s19 + $0x90] sm:$0xff] }
  0x1e   : > { %647 = vmatpush.bf16.msra.mxu2 %v1041_v8  ;;  %v349_v18 = vld [vmem:[%s329_s15] sm:$0xf]  ;;  %v682_v21 = vld [vmem:[#allocation4] sm:$0xf]  ;;  %v1046_v28 = vld [vmem:[%s1148_s19 + $0xd8] sm:$0xff] }
  0x1f   : > { %660 = vmatpush.bf16.msra.mxu3 %v1049_v9  ;;  %v1047_v19 = vld [vmem:[%s1148_s19 + $0xe0] sm:$0xff]  ;;  %v683_v22 = vmul.f32 %v349_v18, %v349_v18  ;;  %v1045_v32 = vld [vmem:[%s1148_s19 + $0xd0] sm:$0xff]  ;;  %v1020_v33 = vld [vmem:[%s1148_s19 + $0x8] sm:$0xff]  ;;  %v352_v37 = vperm.slane %v349_v18, 0  ;;  %v353_v38 = vperm.slane %v349_v18, 1  ;;  %v354_v41 = vperm.slane %v349_v18, 2 }
  0x20   : > { %622 = vmatpush.bf16.msra.mxu0 %v1024_v10  ;;  %v675_v20 = vld [vmem:[#allocation3] sm:$0xf]  ;;  %v1028_v34 = vld [vmem:[%s1148_s19 + $0x48] sm:$0xff]  ;;  %v355_v42 = vperm.slane %v349_v18, 3  ;;  %v350_v57 = vld [vmem:[#allocation2] sm:$0x1] }
  0x21   : > { %635 = vmatpush.bf16.msra.mxu1 %v1032_v11  ;;  %v676_v23 = vadd.f32 %v675_v20, %v349_v18  ;;  %v684_v24 = vadd.f32 %v683_v22, %v682_v21  ;;  %v1036_v35 = vld [vmem:[%s1148_s19 + $0x88] sm:$0xff]  ;;  %v1019_v39 = vld [vmem:[%s1148_s19] sm:$0xff]  ;;  %v360_v45 = vpack.c.bf16 %v352_v37, %v352_v37  ;;  %v361_v46 = vpack.c.bf16 %v353_v38, %v353_v38 }
  0x22   : > { %648 = vmatpush.bf16.msra.mxu2 %v1040_v12  ;;  %v1044_v36 = vld [vmem:[%s1148_s19 + $0xc8] sm:$0xff]  ;;  %v1027_v40 = vld [vmem:[%s1148_s19 + $0x40] sm:$0xff]  ;;  %v362_v47 = vpack.c.bf16 %v354_v41, %v354_v41  ;;  %v363_v48 = vpack.c.bf16 %v355_v42, %v355_v42 }
  0x23   : > { %661 = vmatpush.bf16.msra.mxu3 %v1048_v13  ;;  %681 = vst.msk [vmem:[#allocation3] sm:$0xf] %vm679_vm2, %v676_v23  ;;  %v1035_v43 = vld [vmem:[%s1148_s19 + $0x80] sm:$0xff] }
  0x24   : > { %623 = vmatpush.bf16.msra.mxu0 %v1023_v15  ;;  %685 = vst.msk [vmem:[#allocation4] sm:$0xf] %vm679_vm2, %v684_v24  ;;  %v1043_v44 = vld [vmem:[%s1148_s19 + $0xc0] sm:$0xff] }
  0x25   : > { %636 = vmatpush.bf16.msra.mxu1 %v1031_v16 }
  0x26   : > { %649 = vmatpush.bf16.msra.mxu2 %v1039_v17 }
  0x27   : > { %662 = vmatpush.bf16.msra.mxu3 %v1047_v19 }
  0x28   : > { %624 = vmatpush.bf16.msra.mxu0 %v1022_v25 }
  0x29   : > { %637 = vmatpush.bf16.msra.mxu1 %v1030_v26 }
  0x2a   : > { %650 = vmatpush.bf16.msra.mxu2 %v1038_v27 }
  0x2b   : > { %663 = vmatpush.bf16.msra.mxu3 %v1046_v28 }
  0x2c   : > { %625 = vmatpush.bf16.msra.mxu0 %v1021_v29 }
  0x2d   : > { %638 = vmatpush.bf16.msra.mxu1 %v1029_v30 }
  0x2e   : > { %651 = vmatpush.bf16.msra.mxu2 %v1037_v31 }
  0x2f   : > { %664 = vmatpush.bf16.msra.mxu3 %v1045_v32 }
  0x30   : > { %626 = vmatpush.bf16.msra.mxu0 %v1020_v33 }
  0x31   : > { %639 = vmatpush.bf16.msra.mxu1 %v1028_v34 }
  0x32   : > { %652 = vmatpush.bf16.msra.mxu2 %v1036_v35 }
  0x33   : > { %665 = vmatpush.bf16.msra.mxu3 %v1044_v36 }
  0x34   : > { %627 = vmatpush.bf16.msra.mxu0 %v1019_v39 }
  0x35   : > { %640 = vmatpush.bf16.msra.mxu1 %v1027_v40 }
  0x36   : > { %653 = vmatpush.bf16.msra.mxu2 %v1035_v43 }
  0x37   : > { %666 = vmatpush.bf16.msra.mxu3 %v1043_v44  ;;  %628 = vmatmul.bf16.vlgmr.msra.gmra.mxu0 %v360_v45 }
  0x38   : > { %641 = vmatmul.bf16.vlgmr.msra.gmra.mxu1 %v361_v46 }
  0x39   : > { %654 = vmatmul.bf16.vlgmr.msra.gmra.mxu2 %v362_v47 }
  0x3a   : > { %667 = vmatmul.bf16.vlgmr.msra.gmra.mxu3 %v363_v48 }
  0xb4   : > { %v629_v49 = vpop.f32.mrf.mxu0 }
  0xb5   : > { %v642_v50 = vpop.f32.mrf.mxu1 }
  0xb6   : > { %v643_v51 = vadd.f32 %v642_v50, %v629_v49 }
  0xbc   : > { %v655_v52 = vpop.f32.mrf.mxu2  ;;  %v631_v55 = vpop.f32.mrf.mxu0 }
  0xbd   : > { %v668_v53 = vpop.f32.mrf.mxu3  ;;  %v656_v54 = vadd.f32 %v655_v52, %v643_v51  ;;  %v644_v56 = vpop.f32.mrf.mxu1 }
  0xbf   : > { %v669_v58 = vadd.f32 %v668_v53, %v656_v54 }
  0xc1   : > { %v672_v59 = vadd.f32 %v669_v58, %v350_v57  ;;  %689 = sbr.rel (%p1014_p6) target bundleno = 638 (0x27e), region = 60 }
  0xc3   : > { %674 = vst.msk [vmem:[#allocation2] sm:$0x1] %vm673_vm3, %v672_v59 }
  0xc4   : > { %v657_v60 = vpop.f32.mrf.mxu2 }
  0xc5   : > { %v670_v61 = vpop.f32.mrf.mxu3 }
  0xc6   : > { %v690_v62 = vld [vmem:[#allocation3] sm:$0xf]  ;;  %vm700_vm4 = vcmask 1040384   ;;  %v710_v63 = vld [vmem:[#allocation4] sm:$0xf]  ;;  %vm788_vm5 = vcmask 1043456  }
  0xc7   : > { %v692_v0 = vperm.slane %v690_v62, 0  ;;  %v693_v1 = vperm.slane %v690_v62, 1  ;;  %v694_v2 = vperm.slane %v690_v62, 2  ;;  %v695_v3 = vperm.slane %v690_v62, 3  ;;  %v782_v22 = vld [vmem:[%s1270_s6 + $0x60] sm:$0xf] }
  0xc8   : > { %v712_v4 = vperm.slane %v710_v63, 0  ;;  %v713_v5 = vperm.slane %v710_v63, 1  ;;  %v714_v9 = vperm.slane %v710_v63, 2  ;;  %v715_v16 = vperm.slane %v710_v63, 3  ;;  %1015 = vmatpush.msk.msra.mxu0 %vm788_vm5, %v782_v22  ;;  %v781_v23 = vld [vmem:[%s1270_s6 + $0x58] sm:$0xff]  ;;  %v780_v24 = vld [vmem:[%s1270_s6 + $0x50] sm:$0xff] }
  0xc9   : > { %v701_v6 = vsel %vm700_vm4, %v692_v0, 0.0  ;;  %v702_v7 = vsel %vm700_vm4, %v693_v1, 0.0  ;;  %v704_v8 = vsel %vm700_vm4, %v694_v2, 0.0  ;;  %v706_v13 = vsel %vm700_vm4, %v695_v3, 0.0  ;;  %v779_v25 = vld [vmem:[%s1270_s6 + $0x48] sm:$0xff]  ;;  %v778_v26 = vld [vmem:[%s1270_s6 + $0x40] sm:$0xff] }
  0xca   : > { %v703_v10 = vadd.f32 %v702_v7, %v701_v6  ;;  %v720_v11 = vsel %vm700_vm4, %v712_v4, 0.0  ;;  %v721_v12 = vsel %vm700_vm4, %v713_v5, 0.0  ;;  %v723_v17 = vsel %vm700_vm4, %v714_v9, 0.0  ;;  %796 = vmatpush.msra.mxu0 %v781_v23  ;;  %v777_v27 = vld [vmem:[%s1270_s6 + $0x38] sm:$0xff]  ;;  %v776_v28 = vld [vmem:[%s1270_s6 + $0x30] sm:$0xff]  ;;  %v775_v29 = vld [vmem:[%s1270_s6 + $0x28] sm:$0xff] }
  0xcb   : > { %v722_v15 = vadd.f32 %v721_v12, %v720_v11  ;;  %v725_v20 = vsel %vm700_vm4, %v715_v16, 0.0  ;;  %v774_v30 = vld [vmem:[%s1270_s6 + $0x20] sm:$0xff]  ;;  %v773_v32 = vld [vmem:[%s1270_s6 + $0x18] sm:$0xff]  ;;  %v772_v33 = vld [vmem:[%s1270_s6 + $0x10] sm:$0xff]  ;;  %vm784_vm13 = vcmask 818176   ;;  %vm812_vm14 = vcmask 892928  }
  0xcc   : > { %v705_v14 = vadd.f32 %v704_v8, %v703_v10  ;;  %797 = vmatpush.msra.mxu0 %v780_v24  ;;  %v751_v34 = vld [vmem:[%s1268_s4] sm:$0x1]  ;;  %v771_v37 = vld [vmem:[%s1270_s6 + $0x8] sm:$0xff] }
  0xcd   : > { %v724_v19 = vadd.f32 %v723_v17, %v722_v15  ;;  %v753_v35 = vld [vmem:[%s1269_s5] sm:$0x1] }
  0xce   : > { %v707_v18 = vadd.f32 %v706_v13, %v705_v14  ;;  %798 = vmatpush.msra.mxu0 %v779_v25  ;;  %v754_v38 = vsub.f32 %v753_v35, %v751_v34  ;;  %v770_v39 = vld [vmem:[%s1270_s6] sm:$0xff] }
  0xcf   : > { %v726_v21 = vadd.f32 %v725_v20, %v724_v19  ;;  %v745_v50 = vld [vmem:[%s1266_s2] sm:$0x1] }
  0xd0   : > { %708 = vadd.xlane.f32.xlu0 %v707_v18  ;;  %799 = vmatpush.msra.mxu0 %v778_v26  ;;  %1060 = vrcp.f32 %v754_v38  ;;  %vm760_vm6 = vweird.f32 %v754_v38  ;;  %v744_v55 = vld [vmem:[#allocation2] sm:$0x1]  ;;  %v766_v57 = vand.u32 2147483648, %v754_v38  ;;  %v764_v59 = vand.u32 2147483647, %v754_v38 }
  0xd1   : > { %v749_v63 = vld [vmem:[%s1267_s3] sm:$0x1] }
  0xd2   : > { %800 = vmatpush.msra.mxu0 %v777_v27  ;;  %v767_v0 = vor.u32 1.1754944e-38, %v766_v57  ;;  %vm765_vm12 = vcmp.eq.f32.partialorder %v764_v59, 8.507059e+37  ;;  %v783_v7 = vld [vmem:[%s1271_s7] sm:$0x1] }
  0xd4   : > { %801 = vmatpush.msra.mxu0 %v776_v28 }
  0xd6   : > { %802 = vmatpush.msra.mxu0 %v775_v29  ;;  %v1061_v45 = vpop.eup %1060 }
  0xd7   : > { %v756_v46 = vmul.f32 %v1061_v45, %v754_v38  ;;  %vm761_vm7 = vweird.f32 %v1061_v45 }
  0xd8   : > { %727 = vadd.xlane.f32.xlu0 %v726_v21  ;;  %803 = vmatpush.msra.mxu0 %v774_v30  ;;  %vm762_vm10 = vmor %vm760_vm6, %vm761_vm7 }
  0xd9   : > { %v757_v48 = vsub.f32 1.0, %v756_v46 }
  0xda   : > { %804 = vmatpush.msra.mxu0 %v773_v32 }
  0xdb   : > { %v758_v52 = vmul.f32 %v1061_v45, %v757_v48 }
  0xdc   : > { %805 = vmatpush.msra.mxu0 %v772_v33 }
  0xdd   : > { %v759_v58 = vadd.f32 %v1061_v45, %v758_v52 }
  0xde   : > { %806 = vmatpush.msra.mxu0 %v771_v37 }
  0xdf   : > { %v763_v2 = vsel %vm762_vm10, %v1061_v45, %v759_v58 }
  0xe0   : > { %807 = vmatpush.msra.mxu0 %v770_v39  ;;  %v768_v4 = vsel %vm765_vm12, %v767_v0, %v763_v2 }
 0x143   : > { %v709_v31 = vpop.xlane.xlu0 %708 }
 0x144   : > { %v729_v36 = vmul.f32 0.0006510417, %v709_v31 }
 0x146   : > { %v730_v40 = vmul.f32 %v729_v36, %v709_v31  ;;  %v746_v54 = vmul.f32 %v745_v50, %v729_v36 }
 0x148   : > { %v747_v61 = vsub.f32 %v744_v55, %v746_v54 }
 0x14b   : > { %v728_v41 = vpop.xlane.xlu0 %727 }
 0x14c   : > { %v731_v42 = vsub.f32 %v728_v41, %v730_v40 }
 0x14e   : > { %v732_v43 = vmul.f32 0.0006514658, %v731_v42 }
 0x150   : > { %v733_v44 = vmax.f32 %v732_v43, 1e-12 }
 0x152   : > { %1062 = vrsqrt.f32 %v733_v44  ;;  %vm740_vm9 = vweird.f32 %v733_v44 }
 0x158   : > { %v1063_v47 = vpop.eup %1062 }
 0x159   : > { %v735_v49 = vmul.f32 %v1063_v47, %v733_v44  ;;  %vm741_vm8 = vweird.f32 %v1063_v47 }
 0x15a   : > { %vm742_vm11 = vmor %vm740_vm9, %vm741_vm8 }
 0x15b   : > { %v736_v51 = vmul.f32 %v1063_v47, %v735_v49 }
 0x15d   : > { %v737_v53 = vmul.f32 0.5, %v736_v51 }
 0x15f   : > { %v738_v56 = vsub.f32 1.5, %v737_v53 }
 0x161   : > { %v739_v60 = vmul.f32 %v1063_v47, %v738_v56 }
 0x163   : > { %v743_v62 = vsel %vm742_vm11, %v1063_v47, %v739_v60 }
 0x164   : > { %v748_v1 = vmul.f32 %v747_v61, %v743_v62 }
 0x166   : > { %v750_v3 = vadd.f32 %v749_v63, %v748_v1 }
 0x168   : > { %v752_v5 = vsub.f32 %v750_v3, %v751_v34 }
 0x16a   : > { %v769_v6 = vmul.f32 %v768_v4, %v752_v5 }
 0x16c   : > { %1016 = vmatmul.msk.f32.vlgmr.msra.gmra.mxu0 %vm784_vm13, %v769_v6  ;;  %833 = vst.msk [vmem:[%s1272_s8] sm:$0x1] %vm673_vm3, %v769_v6 }
 0x1e9   : > { %v809_v8 = vpop.f32.mrf.mxu0 }
 0x1ea   : > { %v810_v9 = vadd.f32 %v809_v8, %v783_v7 }
 0x1ec   : > { %v813_v10 = vsel %vm812_vm14, %v810_v9, -inf }
 0x1ed   : > { %814 = vmax.xlane.f32.xlu1 %v813_v10 }
 0x260   : > { %v815_v11 = vpop.xlane.xlu1 %814 }
 0x261   : > { %1064 = vrcp.f32 %v815_v11  ;;  %v827_v15 = vand.u32 2147483648, %v815_v11  ;;  %v825_v17 = vand.u32 2147483647, %v815_v11  ;;  %vm821_vm0 = vweird.f32 %v815_v11 }
 0x263   : > { %v828_v19 = vor.u32 1.1754944e-38, %v827_v15  ;;  %vm826_vm2 = vcmp.eq.f32.partialorder %v825_v17, 8.507059e+37 }
 0x267   : > { %v1065_v12 = vpop.eup %1064 }
 0x268   : > { %v817_v13 = vmul.f32 %v1065_v12, %v815_v11  ;;  %vm822_vm15 = vweird.f32 %v1065_v12 }
 0x269   : > { %vm823_vm1 = vmor %vm821_vm0, %vm822_vm15 }
 0x26a   : > { %v818_v14 = vsub.f32 1.0, %v817_v13 }
 0x26c   : > { %v819_v16 = vmul.f32 %v1065_v12, %v818_v14 }
 0x26e   : > { %v820_v18 = vadd.f32 %v1065_v12, %v819_v16 }
 0x270   : > { %v824_v20 = vsel %vm823_vm1, %v1065_v12, %v820_v18 }
 0x271   : > { %v829_v21 = vsel %vm826_vm2, %v828_v19, %v824_v20 }
 0x272   : > { %v830_v22 = vmul.f32 0.8, %v829_v21 }
 0x274   : > { %v831_v23 = vmul.f32 %v830_v22, %v810_v9 }
 0x276   : > { %1066 = vtanh.f32 %v831_v23 }
 0x27c   : > { %v1067_v24 = vpop.eup %1066 }
 0x27d   : > { %834 = vst.msk [vmem:[%s1273_s9] sm:$0x1] %vm812_vm14, %v1067_v24 }
 0x27e PF: > { %s20_s30 = sadd.s32 1, %s1074_s30  }
 0x27f   : > { %p17_p7 = scmp.ge.s32.totalorder %s20_s30, 5  }
 0x281   :  { %19 = sbr.rel (!%p17_p7) target bundleno = 1 (0x1), region = 97 }

// kernel: broad_guided_filter.4
= control target key start
LH: loop header
LB: loop body
LE: loop exit
PB: predicated region body
PF: predicated region fallthrough
CT: control target
= control target key end

     0   :  { %8 = vsyncpa [#allocation4], 0  ;;  %s1633_s0 = inlined_call_operand.vmem [shape: f32[1,210], index: 0, kind: input, shape index: {}]   ;;  %s1634_s1 = inlined_call_operand.vmem [shape: bf16[210,1536], index: 1, kind: input, shape index: {}]   ;;  %s1635_s2 = inlined_call_operand.hbm [shape: f32[1,1536], index: 2, kind: input, shape index: {}]   ;;  %s1636_s3 = inlined_call_operand.vmem [shape: f32[1,1536], index: 3, kind: output, shape index: {}]  }
   0x1   :  { %10 = vsyncpa [#allocation4 + $0x1], 0  ;;  %s1296_s12 = smov 0   ;;  %s1298_s13 = smov 0  }
   0x2   :  { %s1300_s14 = smov 0   ;;  %s1302_s15 = smov 0  }
   0x3 LB: > { %s898_s16 = sadd.s32 4294967295, %s1274_s15   ;;  %s1316_s17 = sadd.s32 1, %s1274_s15   ;;  %s1274_s15 = sphi %s1302_s15, %s1642_s15   ;;  %s1270_s14 = sphi %s1300_s14, %s1641_s14   ;;  %s1266_s13 = sphi %s1298_s13, %s1640_s13   ;;  %s1262_s12 = sphi %s1296_s12, %s1639_s12  }
   0x4   : > { %s41_s18 = ssub.s32 %s1274_s15, %s1316_s17  ;;  %s44_s19 = sadd.s32 1, %s1270_s14 }
   0x5   : > { %p42_p0 = scmp.eq.s32.totalorder %s41_s18, 0  ;;  %p51_p1 = scmp.ne.s32.totalorder %s1270_s14, %s1266_s13 }
   0x6   : > { %p52_p2 = scmp.eq.s32.totalorder %s1274_s15, 0  ;;  %p83_p3 = scmp.ne.s32.totalorder %s1266_s13, %s1262_s12 }
   0x7   : > { %s1326_s20 = scalar_select %p42_p0, %s1270_s14, %s44_s19  }
   0x8   : > { %p1328_p4 = por %p52_p2, %p51_p1  ;;  %p84_p5 = scmp.eq.s32.totalorder %s898_s16, 0 }
   0x9   : > { %p901_p7 = scmp.ge.s32.totalorder %s1274_s15, 3 }
   0xa   : > { %p1334_p6 = por %p84_p5, %p83_p3 }
   0xb   : > { %132 = sbr.rel (%p901_p7) target bundleno = 90 (0x5a), region = 20 }
  0x10   : > { %135 = sbr.rel (!%p1328_p4) target bundleno = 74 (0x4a), region = 24  ;;  %s137_s23 = sand.u32 (%p1328_p4), 1, %s1270_s14  }
  0x11   : > { %s1123_s24 = sshll.u32 (%p1328_p4), %s1274_s15, 4  ;;  %s1176_s25 = smul.u32 (%p1328_p4), 432, %s137_s23 }
  0x12   : > { %s1346_s28 = scalar_lea.vmem (%p1328_p4), %s1634_s1, %s1123_s24 }
  0x13   : > { %v155_v0 = vld [vmem:[%s1346_s28] sm:$0xff] (%p1328_p4)  ;;  %v157_v1 = vld [vmem:[%s1346_s28 + $0x8] sm:$0xff] (%p1328_p4)  ;;  %v159_v2 = vld [vmem:[%s1346_s28 + $0x30] sm:$0xff] (%p1328_p4)  ;;  %s1351_s29 = scalar_lea.vmem (%p1328_p4), [#allocation2], %s1176_s25 }
  0x14   : > { %156 = vst [vmem:[%s1351_s29] sm:$0xff] (%p1328_p4), %v155_v0  ;;  %v161_v3 = vld [vmem:[%s1346_s28 + $0x38] sm:$0xff] (%p1328_p4)  ;;  %v163_v4 = vld [vmem:[%s1346_s28 + $0x60] sm:$0xff] (%p1328_p4)  ;;  %v165_v5 = vld [vmem:[%s1346_s28 + $0x68] sm:$0xff] (%p1328_p4) }
  0x15   : > { %158 = vst [vmem:[%s1351_s29 + $0x8] sm:$0xff] %v157_v1  ;;  %v167_v6 = vld [vmem:[%s1346_s28 + $0x90] sm:$0xff]  ;;  %v169_v7 = vld [vmem:[%s1346_s28 + $0x98] sm:$0xff]  ;;  %v171_v8 = vld [vmem:[%s1346_s28 + $0xc0] sm:$0xff] }
  0x16   : > { %160 = vst [vmem:[%s1351_s29 + $0x10] sm:$0xff] %v159_v2  ;;  %v173_v9 = vld [vmem:[%s1346_s28 + $0xc8] sm:$0xff]  ;;  %v175_v10 = vld [vmem:[%s1346_s28 + $0xf0] sm:$0xff]  ;;  %v177_v11 = vld [vmem:[%s1346_s28 + $0xf8] sm:$0xff] }
  0x17   : > { %162 = vst [vmem:[%s1351_s29 + $0x18] sm:$0xff] %v161_v3  ;;  %v179_v12 = vld [vmem:[%s1346_s28 + $0x120] sm:$0xff]  ;;  %v181_v13 = vld [vmem:[%s1346_s28 + $0x128] sm:$0xff]  ;;  %v183_v14 = vld [vmem:[%s1346_s28 + $0x150] sm:$0xff] }
  0x18   : > { %164 = vst [vmem:[%s1351_s29 + $0x20] sm:$0xff] %v163_v4  ;;  %v185_v15 = vld [vmem:[%s1346_s28 + $0x158] sm:$0xff]  ;;  %v187_v16 = vld [vmem:[%s1346_s28 + $0x180] sm:$0xff]  ;;  %v189_v17 = vld [vmem:[%s1346_s28 + $0x188] sm:$0xff] }
  0x19   : > { %166 = vst [vmem:[%s1351_s29 + $0x28] sm:$0xff] %v165_v5  ;;  %v191_v18 = vld [vmem:[%s1346_s28 + $0x1b0] sm:$0xff]  ;;  %v193_v19 = vld [vmem:[%s1346_s28 + $0x1b8] sm:$0xff]  ;;  %v195_v20 = vld [vmem:[%s1346_s28 + $0x1e0] sm:$0xff] }
  0x1a   : > { %168 = vst [vmem:[%s1351_s29 + $0x30] sm:$0xff] %v167_v6  ;;  %v197_v21 = vld [vmem:[%s1346_s28 + $0x1e8] sm:$0xff]  ;;  %v199_v22 = vld [vmem:[%s1346_s28 + $0x210] sm:$0xff]  ;;  %v201_v23 = vld [vmem:[%s1346_s28 + $0x218] sm:$0xff] }
  0x1b   : > { %170 = vst [vmem:[%s1351_s29 + $0x38] sm:$0xff] %v169_v7  ;;  %v203_v24 = vld [vmem:[%s1346_s28 + $0x240] sm:$0xff]  ;;  %v205_v25 = vld [vmem:[%s1346_s28 + $0x248] sm:$0xff]  ;;  %v207_v26 = vld [vmem:[%s1346_s28 + $0x270] sm:$0xff] }
  0x1c   : > { %172 = vst [vmem:[%s1351_s29 + $0x40] sm:$0xff] %v171_v8  ;;  %v209_v27 = vld [vmem:[%s1346_s28 + $0x278] sm:$0xff]  ;;  %v211_v28 = vld [vmem:[%s1346_s28 + $0x2a0] sm:$0xff]  ;;  %v213_v29 = vld [vmem:[%s1346_s28 + $0x2a8] sm:$0xff] }
  0x1d   : > { %174 = vst [vmem:[%s1351_s29 + $0x48] sm:$0xff] %v173_v9  ;;  %v215_v30 = vld [vmem:[%s1346_s28 + $0x2d0] sm:$0xff]  ;;  %v217_v31 = vld [vmem:[%s1346_s28 + $0x2d8] sm:$0xff]  ;;  %v219_v32 = vld [vmem:[%s1346_s28 + $0x300] sm:$0xff] }
  0x1e   : > { %176 = vst [vmem:[%s1351_s29 + $0x50] sm:$0xff] %v175_v10  ;;  %v221_v33 = vld [vmem:[%s1346_s28 + $0x308] sm:$0xff]  ;;  %v223_v34 = vld [vmem:[%s1346_s28 + $0x330] sm:$0xff]  ;;  %v225_v35 = vld [vmem:[%s1346_s28 + $0x338] sm:$0xff] }
  0x1f   : > { %178 = vst [vmem:[%s1351_s29 + $0x58] sm:$0xff] %v177_v11  ;;  %v227_v36 = vld [vmem:[%s1346_s28 + $0x360] sm:$0xff]  ;;  %v229_v37 = vld [vmem:[%s1346_s28 + $0x368] sm:$0xff]  ;;  %v231_v38 = vld [vmem:[%s1346_s28 + $0x390] sm:$0xff] }
  0x20   : > { %180 = vst [vmem:[%s1351_s29 + $0x60] sm:$0xff] %v179_v12  ;;  %v233_v39 = vld [vmem:[%s1346_s28 + $0x398] sm:$0xff]  ;;  %v235_v40 = vld [vmem:[%s1346_s28 + $0x3c0] sm:$0xff]  ;;  %v237_v41 = vld [vmem:[%s1346_s28 + $0x3c8] sm:$0xff] }
  0x21   : > { %182 = vst [vmem:[%s1351_s29 + $0x68] sm:$0xff] %v181_v13  ;;  %v239_v42 = vld [vmem:[%s1346_s28 + $0x3f0] sm:$0xff]  ;;  %v241_v43 = vld [vmem:[%s1346_s28 + $0x3f8] sm:$0xff]  ;;  %v243_v44 = vld [vmem:[%s1346_s28 + $0x420] sm:$0xff] }
  0x22   : > { %184 = vst [vmem:[%s1351_s29 + $0x70] sm:$0xff] %v183_v14  ;;  %v245_v45 = vld [vmem:[%s1346_s28 + $0x428] sm:$0xff]  ;;  %v247_v46 = vld [vmem:[%s1346_s28 + $0x450] sm:$0xff]  ;;  %v249_v47 = vld [vmem:[%s1346_s28 + $0x458] sm:$0xff] }
  0x23   : > { %186 = vst [vmem:[%s1351_s29 + $0x78] sm:$0xff] %v185_v15  ;;  %v251_v48 = vld [vmem:[%s1346_s28 + $0x480] sm:$0xff]  ;;  %v253_v49 = vld [vmem:[%s1346_s28 + $0x488] sm:$0xff]  ;;  %v255_v50 = vld [vmem:[%s1346_s28 + $0x4b0] sm:$0xff] }
  0x24   : > { %188 = vst [vmem:[%s1351_s29 + $0x80] sm:$0xff] %v187_v16  ;;  %v257_v51 = vld [vmem:[%s1346_s28 + $0x4b8] sm:$0xff]  ;;  %v259_v52 = vld [vmem:[%s1346_s28 + $0x4e0] sm:$0xff]  ;;  %v261_v53 = vld [vmem:[%s1346_s28 + $0x4e8] sm:$0xff] }
  0x25   : > { %190 = vst [vmem:[%s1351_s29 + $0x88] sm:$0xff] %v189_v17 }
  0x26   : > { %192 = vst [vmem:[%s1351_s29 + $0x90] sm:$0xff] %v191_v18 }
  0x27   : > { %194 = vst [vmem:[%s1351_s29 + $0x98] sm:$0xff] %v193_v19 }
  0x28   : > { %196 = vst [vmem:[%s1351_s29 + $0xa0] sm:$0xff] %v195_v20 }
  0x29   : > { %198 = vst [vmem:[%s1351_s29 + $0xa8] sm:$0xff] %v197_v21 }
  0x2a   : > { %200 = vst [vmem:[%s1351_s29 + $0xb0] sm:$0xff] %v199_v22 }
  0x2b   : > { %202 = vst [vmem:[%s1351_s29 + $0xb8] sm:$0xff] %v201_v23 }
  0x2c   : > { %204 = vst [vmem:[%s1351_s29 + $0xc0] sm:$0xff] %v203_v24 }
  0x2d   : > { %206 = vst [vmem:[%s1351_s29 + $0xc8] sm:$0xff] %v205_v25 }
  0x2e   : > { %208 = vst [vmem:[%s1351_s29 + $0xd0] sm:$0xff] %v207_v26 }
  0x2f   : > { %210 = vst [vmem:[%s1351_s29 + $0xd8] sm:$0xff] %v209_v27 }
  0x30   : > { %212 = vst [vmem:[%s1351_s29 + $0xe0] sm:$0xff] %v211_v28 }
  0x31   : > { %214 = vst [vmem:[%s1351_s29 + $0xe8] sm:$0xff] %v213_v29 }
  0x32   : > { %216 = vst [vmem:[%s1351_s29 + $0xf0] sm:$0xff] %v215_v30 }
  0x33   : > { %218 = vst [vmem:[%s1351_s29 + $0xf8] sm:$0xff] %v217_v31 }
  0x34   : > { %220 = vst [vmem:[%s1351_s29 + $0x100] sm:$0xff] %v219_v32 }
  0x35   : > { %222 = vst [vmem:[%s1351_s29 + $0x108] sm:$0xff] %v221_v33 }
  0x36   : > { %224 = vst [vmem:[%s1351_s29 + $0x110] sm:$0xff] %v223_v34 }
  0x37   : > { %226 = vst [vmem:[%s1351_s29 + $0x118] sm:$0xff] %v225_v35 }
  0x38   : > { %228 = vst [vmem:[%s1351_s29 + $0x120] sm:$0xff] %v227_v36 }
  0x39   : > { %230 = vst [vmem:[%s1351_s29 + $0x128] sm:$0xff] %v229_v37 }
  0x3a   : > { %232 = vst [vmem:[%s1351_s29 + $0x130] sm:$0xff] %v231_v38 }
  0x3b   : > { %234 = vst [vmem:[%s1351_s29 + $0x138] sm:$0xff] %v233_v39 }
  0x3c   : > { %236 = vst [vmem:[%s1351_s29 + $0x140] sm:$0xff] %v235_v40 }
  0x3d   : > { %238 = vst [vmem:[%s1351_s29 + $0x148] sm:$0xff] %v237_v41 }
  0x3e   : > { %240 = vst [vmem:[%s1351_s29 + $0x150] sm:$0xff] %v239_v42 }
  0x3f   : > { %242 = vst [vmem:[%s1351_s29 + $0x158] sm:$0xff] %v241_v43 }
  0x40   : > { %244 = vst [vmem:[%s1351_s29 + $0x160] sm:$0xff] %v243_v44 }
  0x41   : > { %246 = vst [vmem:[%s1351_s29 + $0x168] sm:$0xff] %v245_v45 }
  0x42   : > { %248 = vst [vmem:[%s1351_s29 + $0x170] sm:$0xff] %v247_v46 }
  0x43   : > { %250 = vst [vmem:[%s1351_s29 + $0x178] sm:$0xff] %v249_v47 }
  0x44   : > { %252 = vst [vmem:[%s1351_s29 + $0x180] sm:$0xff] %v251_v48 }
  0x45   : > { %254 = vst [vmem:[%s1351_s29 + $0x188] sm:$0xff] %v253_v49 }
  0x46   : > { %256 = vst [vmem:[%s1351_s29 + $0x190] sm:$0xff] %v255_v50 }
  0x47   : > { %258 = vst [vmem:[%s1351_s29 + $0x198] sm:$0xff] %v257_v51 }
  0x48   : > { %260 = vst [vmem:[%s1351_s29 + $0x1a0] sm:$0xff] %v259_v52 }
  0x49   : > { %262 = vst [vmem:[%s1351_s29 + $0x1a8] sm:$0xff] %v261_v53 }
  0x4a PF: > { %s269_s30 = sand.u32 1, %s1270_s14   ;;  %s905_s4 = sshll.u32 %s1274_s15, 2 }
  0x4b   : > { %s904_s5 = sshll.u32 %s269_s30, 2  ;;  %s277_s8 = scalar_lea.hbm %s1635_s2, %s905_s4 }
  0x4c   : > { %s279_s9 = sshll.u32 %s277_s8, 4  ;;  %s273_s10 = scalar_lea.vmem [#allocation3], %s904_s5  ;;  %s280_s9 = int_to_ptr.hbm [resolvable:$true] %s279_s9 }
  0x4d   : > { %s281_s11 = sshll.u32 %s273_s10, 4  ;;  %s270_s12 = scalar_lea.sflag [#allocation4], %s269_s30  ;;  %s282_s11 = int_to_ptr.vmem [resolvable:$true] %s281_s11 }
  0x4e   : > { %s1212_s18 = sshra.s32 %s280_s9, 4  ;;  %s1218_s25 = scalar_lea.hbm %s1635_s2, 12  ;;  %s1213_s18 = int_to_ptr.hbm [resolvable:$true] %s1212_s18 }
  0x4f   : > { %s1214_s19 = scalar_lea.hbm %s1213_s18, 4  ;;  %p1219_p11 = scmp.lt.s32.totalorder %s1213_s18, %s1635_s2 }
  0x50   : > { %p1215_p8 = scmp.ne.s32.totalorder %s1213_s18, %s1214_s19  ;;  %p1220_p12 = scmp.lt.s32.totalorder %s1218_s25, %s1214_s19 }
  0x52   : > { %p1216_p9 = pnand %p1215_p8, %p1328_p4  ;;  %p1221_p13 = por %p1220_p12, %p1219_p11 }
  0x54   : > { %p1217_p10 = pneg %p1216_p9 }
  0x56   : > { %p1222_p0 = pnand %p1221_p13, %p1217_p10 }
  0x58   : > { %1225 = shalt.err (!%p1222_p0)
}
  0x59   : > { %1178 = dma.hbm_to_vmem [thread:$0]  (%p1328_p4), %s280_s9, 64, %s282_s11, %s270_s12  }
  0x5a PF: > { %p906_p1 = scmp.ge.s32.totalorder %s1274_s15, 1  ;;  %p286_p2 = scmp.lt.s32.totalorder %s1274_s15, 4 }
  0x5c   : > { %p287_p3 = pnand %p906_p1, %p286_p2 }
  0x5d   : > { %s293_s28 = sand.u32 (!%p287_p3), 1, %s1266_s13  }
  0x5e   : > { %290 = sbr.rel (%p287_p3) target bundleno = 303 (0x12f), region = 51  ;;  %s907_s30 = sshll.u32 (!%p287_p3), %s293_s28, 2 }
  0x5f   : > { %s1177_s29 = smul.u32 (!%p287_p3), 432, %s293_s28  ;;  %s300_s5 = scalar_lea.sflag (!%p287_p3), [#allocation4], %s293_s28 }
  0x60   : > { %s1478_s6 = scalar_lea.vmem (!%p287_p3), [#allocation3], %s907_s30 }
  0x61   : > { %s1476_s4 = scalar_lea.vmem (!%p287_p3), [#allocation2], %s1177_s29 }
  0x63   : > { %1257 = dma.done.wait (%p1334_p6), %s300_s5, 64  }
  0x64   : > { %1259 = vsyncadd (%p1334_p6), %s300_s5, 4294967232  ;;  %v1023_v54 = vld [vmem:[%s1476_s4 + $0xe0] sm:$0xf]  ;;  %v1154_v55 = vld [vmem:[%s1476_s4 + $0xec] sm:$0xf0]  ;;  %vm684_vm0 = vcmask 1040384  }
  0x65   : > { %v1152_v56 = vld [vmem:[%s1476_s4 + $0xe4] sm:$0xf]  ;;  %v1024_v57 = vor.u32 %v1154_v55, %v1023_v54  ;;  %v1025_v58 = vld [vmem:[%s1476_s4 + $0xf0] sm:$0xf0]  ;;  %v1007_v60 = vld [vmem:[%s1476_s4 + $0xc0] sm:$0xf] }
  0x66   : > { %v398_v59 = vld [vmem:[%s1476_s4 + $0x1a0] sm:$0x11]  ;;  %v1028_v61 = vor.u32 %v1152_v56, %v1025_v58  ;;  %v1150_v0 = vld [vmem:[%s1476_s4 + $0xcc] sm:$0xf0]  ;;  %v1009_v2 = vld [vmem:[%s1476_s4 + $0xd0] sm:$0xf0] }
  0x67   : > { %v559_v62 = vunpack.c.l.b16 %v398_v59  ;;  %v560_v63 = vunpack.c.h.b16 %v398_v59  ;;  %v1148_v1 = vld [vmem:[%s1476_s4 + $0xc4] sm:$0xf]  ;;  %697 = vmatpush.bf16.msra.mxu0 %v1024_v57  ;;  %v1103_v3 = vld [vmem:[%s1476_s4 + $0x180] sm:$0xf]  ;;  %v1174_v4 = vld [vmem:[%s1476_s4 + $0x18c] sm:$0xf0]  ;;  %v1008_v7 = vor.u32 %v1150_v0, %v1007_v60 }
  0x68   : > { %723 = vmatpush.bf16.msra.mxu2 %v1028_v61  ;;  %v1012_v8 = vor.u32 %v1148_v1, %v1009_v2  ;;  %v1172_v9 = vld [vmem:[%s1476_s4 + $0x184] sm:$0xf]  ;;  %v1105_v10 = vld [vmem:[%s1476_s4 + $0x190] sm:$0xf0]  ;;  %v991_v11 = vld [vmem:[%s1476_s4 + $0xa0] sm:$0xf]  ;;  %v1104_v17 = vor.u32 %v1174_v4, %v1103_v3 }
  0x69   : > { %v615_v5 = vpack.c.b16 %v559_v62, %v559_v62  ;;  %v616_v6 = vpack.c.b16 %v560_v63, %v560_v63  ;;  %v1146_v12 = vld [vmem:[%s1476_s4 + $0xac] sm:$0xf0]  ;;  %v1144_v13 = vld [vmem:[%s1476_s4 + $0xa4] sm:$0xf]  ;;  %v993_v14 = vld [vmem:[%s1476_s4 + $0xb0] sm:$0xf0]  ;;  %v1108_v18 = vor.u32 %v1172_v9, %v1105_v10 }
  0x6a   : > { %v1087_v19 = vld [vmem:[%s1476_s4 + $0x160] sm:$0xf]  ;;  %v1170_v20 = vld [vmem:[%s1476_s4 + $0x16c] sm:$0xf0]  ;;  %v992_v21 = vor.u32 %v1146_v12, %v991_v11  ;;  %v996_v22 = vor.u32 %v1144_v13, %v993_v14  ;;  %v1168_v23 = vld [vmem:[%s1476_s4 + $0x164] sm:$0xf] }
  0x6b   : > { %v686_v15 = vsel %vm684_vm0, %v615_v5, 0  ;;  %v689_v16 = vsel %vm684_vm0, %v616_v6, 0  ;;  %698 = vmatpush.bf16.msra.mxu0 %v1008_v7  ;;  %v1089_v24 = vld [vmem:[%s1476_s4 + $0x170] sm:$0xf0]  ;;  %v975_v25 = vld [vmem:[%s1476_s4 + $0x80] sm:$0xf]  ;;  %v1088_v29 = vor.u32 %v1170_v20, %v1087_v19 }
  0x6c   : > { %712 = vmatpush.bf16.msra.mxu1 %v686_v15  ;;  %738 = vmatpush.bf16.msra.mxu3 %v689_v16  ;;  %v1142_v26 = vld [vmem:[%s1476_s4 + $0x8c] sm:$0xf0]  ;;  %v1140_v27 = vld [vmem:[%s1476_s4 + $0x84] sm:$0xf]  ;;  %v977_v28 = vld [vmem:[%s1476_s4 + $0x90] sm:$0xf0]  ;;  %v1092_v30 = vor.u32 %v1168_v23, %v1089_v24 }
  0x6d   : > { %724 = vmatpush.bf16.msra.mxu2 %v1012_v8  ;;  %v1071_v31 = vld [vmem:[%s1476_s4 + $0x140] sm:$0xf]  ;;  %v1166_v32 = vld [vmem:[%s1476_s4 + $0x14c] sm:$0xf0]  ;;  %v976_v33 = vor.u32 %v1142_v26, %v975_v25  ;;  %v980_v34 = vor.u32 %v1140_v27, %v977_v28  ;;  %v1164_v35 = vld [vmem:[%s1476_s4 + $0x144] sm:$0xf] }
  0x6e   : > { %v1073_v36 = vld [vmem:[%s1476_s4 + $0x150] sm:$0xf0]  ;;  %v959_v37 = vld [vmem:[%s1476_s4 + $0x60] sm:$0xf]  ;;  %v1138_v38 = vld [vmem:[%s1476_s4 + $0x6c] sm:$0xf0]  ;;  %v1072_v41 = vor.u32 %v1166_v32, %v1071_v31 }
  0x6f   : > { %699 = vmatpush.bf16.msra.mxu0 %v992_v21  ;;  %v1136_v39 = vld [vmem:[%s1476_s4 + $0x64] sm:$0xf]  ;;  %v961_v40 = vld [vmem:[%s1476_s4 + $0x70] sm:$0xf0]  ;;  %v1076_v42 = vor.u32 %v1164_v35, %v1073_v36  ;;  %v1055_v43 = vld [vmem:[%s1476_s4 + $0x120] sm:$0xf]  ;;  %v960_v46 = vor.u32 %v1138_v38, %v959_v37 }
  0x70   : > { %713 = vmatpush.bf16.msra.mxu1 %v1104_v17  ;;  %739 = vmatpush.bf16.msra.mxu3 %v1108_v18  ;;  %v1162_v44 = vld [vmem:[%s1476_s4 + $0x12c] sm:$0xf0]  ;;  %v1160_v45 = vld [vmem:[%s1476_s4 + $0x124] sm:$0xf]  ;;  %v964_v47 = vor.u32 %v1136_v39, %v961_v40  ;;  %v1057_v48 = vld [vmem:[%s1476_s4 + $0x130] sm:$0xf0] }
  0x71   : > { %725 = vmatpush.bf16.msra.mxu2 %v996_v22  ;;  %v943_v49 = vld [vmem:[%s1476_s4 + $0x40] sm:$0xf]  ;;  %v1134_v50 = vld [vmem:[%s1476_s4 + $0x4c] sm:$0xf0]  ;;  %v1132_v51 = vld [vmem:[%s1476_s4 + $0x44] sm:$0xf]  ;;  %v1056_v55 = vor.u32 %v1162_v44, %v1055_v43  ;;  %v1060_v56 = vor.u32 %v1160_v45, %v1057_v48 }
  0x72   : > { %v945_v52 = vld [vmem:[%s1476_s4 + $0x50] sm:$0xf0]  ;;  %v399_v53 = vld [vmem:[%s1476_s4 + $0x1a8] sm:$0x11]  ;;  %v1039_v57 = vld [vmem:[%s1476_s4 + $0x100] sm:$0xf]  ;;  %v944_v60 = vor.u32 %v1134_v50, %v943_v49 }
  0x73   : > { %700 = vmatpush.bf16.msra.mxu0 %v976_v33  ;;  %v561_v54 = vunpack.c.l.b16 %v399_v53  ;;  %v1158_v58 = vld [vmem:[%s1476_s4 + $0x10c] sm:$0xf0]  ;;  %v1156_v59 = vld [vmem:[%s1476_s4 + $0x104] sm:$0xf]  ;;  %v948_v61 = vor.u32 %v1132_v51, %v945_v52  ;;  %v1041_v62 = vld [vmem:[%s1476_s4 + $0x110] sm:$0xf0]  ;;  %v562_v3 = vunpack.c.h.b16 %v399_v53 }
  0x74   : > { %714 = vmatpush.bf16.msra.mxu1 %v1088_v29  ;;  %740 = vmatpush.bf16.msra.mxu3 %v1092_v30  ;;  %v927_v63 = vld [vmem:[%s1476_s4 + $0x20] sm:$0xf]  ;;  %v1130_v0 = vld [vmem:[%s1476_s4 + $0x2c] sm:$0xf0]  ;;  %v1128_v1 = vld [vmem:[%s1476_s4 + $0x24] sm:$0xf]  ;;  %v1040_v9 = vor.u32 %v1158_v58, %v1039_v57  ;;  %v1044_v10 = vor.u32 %v1156_v59, %v1041_v62 }
  0x75   : > { %726 = vmatpush.bf16.msra.mxu2 %v980_v34  ;;  %v929_v2 = vld [vmem:[%s1476_s4 + $0x30] sm:$0xf0]  ;;  %v338_v4 = vld [vmem:[%s1633_s0] sm:$0x3]  ;;  %v1031_v5 = vld [vmem:[%s1476_s4 + $0xe8] sm:$0xf]  ;;  %v617_v7 = vpack.c.b16 %v561_v54, %v561_v54  ;;  %v928_v11 = vor.u32 %v1130_v0, %v927_v63  ;;  %v618_v20 = vpack.c.b16 %v562_v3, %v562_v3 }
  0x76   : > { %v1155_v6 = vld [vmem:[%s1476_s4 + $0xf4] sm:$0xf0]  ;;  %v341_v8 = vperm.slane %v338_v4, 1  ;;  %v932_v12 = vor.u32 %v1128_v1, %v929_v2  ;;  %v911_v13 = vld [vmem:[%s1476_s4] sm:$0xf]  ;;  %v340_v27 = vperm.slane %v338_v4, 0 }
  0x77   : > { %701 = vmatpush.bf16.msra.mxu0 %v960_v46  ;;  %v1126_v14 = vld [vmem:[%s1476_s4 + $0xc] sm:$0xf0]  ;;  %v1124_v15 = vld [vmem:[%s1476_s4 + $0x4] sm:$0xf]  ;;  %v1032_v16 = vor.u32 %v1155_v6, %v1031_v5  ;;  %v913_v17 = vld [vmem:[%s1476_s4 + $0x10] sm:$0xf0] }
  0x78   : > { %715 = vmatpush.bf16.msra.mxu1 %v1072_v41  ;;  %741 = vmatpush.bf16.msra.mxu3 %v1076_v42  ;;  %v1015_v18 = vld [vmem:[%s1476_s4 + $0xc8] sm:$0xf]  ;;  %v1151_v19 = vld [vmem:[%s1476_s4 + $0xd4] sm:$0xf0]  ;;  %v692_v21 = vsel %vm684_vm0, %v617_v7, 0  ;;  %v1550_v24 = vpack.c.bf16 %v341_v8, %v341_v8  ;;  %vm680_vm1 = vcmask 670720   ;;  %v912_v28 = vor.u32 %v1126_v14, %v911_v13 }
  0x79   : > { %727 = vmatpush.bf16.msra.mxu2 %v964_v47  ;;  %v1111_v22 = vld [vmem:[%s1476_s4 + $0x188] sm:$0xf]  ;;  %v1175_v23 = vld [vmem:[%s1476_s4 + $0x194] sm:$0xf0]  ;;  %v1153_v25 = vld [vmem:[%s1476_s4 + $0xec] sm:$0xf]  ;;  %v916_v29 = vor.u32 %v1124_v15, %v913_v17  ;;  %v1016_v30 = vor.u32 %v1151_v19, %v1015_v18  ;;  %v1564_v39 = vpack.c.bf16 %v340_v27, %v340_v27 }
  0x7a   : > { %v1033_v26 = vld [vmem:[%s1476_s4 + $0xf8] sm:$0xf0]  ;;  %v1112_v31 = vor.u32 %v1175_v23, %v1111_v22  ;;  %v695_v32 = vsel %vm684_vm0, %v618_v20, 0  ;;  %v999_v33 = vld [vmem:[%s1476_s4 + $0xa8] sm:$0xf]  ;;  %s908_s7 = sshll.u32 %s898_s16, 2 }
  0x7b   : > { %702 = vmatpush.bf16.msra.mxu0 %v944_v60  ;;  %v1147_v34 = vld [vmem:[%s1476_s4 + $0xb4] sm:$0xf0]  ;;  %v1036_v35 = vor.u32 %v1153_v25, %v1033_v26  ;;  %v1095_v36 = vld [vmem:[%s1476_s4 + $0x168] sm:$0xf]  ;;  %v1149_v38 = vld [vmem:[%s1476_s4 + $0xcc] sm:$0xf] }
  0x7c   : > { %716 = vmatpush.bf16.msra.mxu1 %v1056_v55  ;;  %742 = vmatpush.bf16.msra.mxu3 %v1060_v56  ;;  %v1171_v37 = vld [vmem:[%s1476_s4 + $0x174] sm:$0xf0]  ;;  %v1017_v40 = vld [vmem:[%s1476_s4 + $0xd8] sm:$0xf0]  ;;  %v1173_v41 = vld [vmem:[%s1476_s4 + $0x18c] sm:$0xf]  ;;  %v1000_v43 = vor.u32 %v1147_v34, %v999_v33 }
  0x7d   : > { %728 = vmatpush.bf16.msra.mxu2 %v948_v61  ;;  %v1113_v42 = vld [vmem:[%s1476_s4 + $0x198] sm:$0xf0]  ;;  %v1096_v44 = vor.u32 %v1171_v37, %v1095_v36  ;;  %v983_v45 = vld [vmem:[%s1476_s4 + $0x88] sm:$0xf]  ;;  %v1143_v46 = vld [vmem:[%s1476_s4 + $0x94] sm:$0xf0]  ;;  %v1020_v47 = vor.u32 %v1149_v38, %v1017_v40 }
  0x7e   : > { %v1116_v48 = vor.u32 %v1173_v41, %v1113_v42  ;;  %v1079_v49 = vld [vmem:[%s1476_s4 + $0x148] sm:$0xf]  ;;  %v1167_v50 = vld [vmem:[%s1476_s4 + $0x154] sm:$0xf0]  ;;  %v1145_v51 = vld [vmem:[%s1476_s4 + $0xac] sm:$0xf]  ;;  %v984_v55 = vor.u32 %v1143_v46, %v983_v45 }
  0x7f   : > { %703 = vmatpush.bf16.msra.mxu0 %v928_v11  ;;  %v1001_v52 = vld [vmem:[%s1476_s4 + $0xb8] sm:$0xf0]  ;;  %v1169_v53 = vld [vmem:[%s1476_s4 + $0x16c] sm:$0xf]  ;;  %v1080_v56 = vor.u32 %v1167_v50, %v1079_v49  ;;  %v967_v57 = vld [vmem:[%s1476_s4 + $0x68] sm:$0xf] }
  0x80   : > { %717 = vmatpush.bf16.msra.mxu1 %v1040_v9  ;;  %743 = vmatpush.bf16.msra.mxu3 %v1044_v10  ;;  %v1097_v54 = vld [vmem:[%s1476_s4 + $0x178] sm:$0xf0]  ;;  %v1139_v58 = vld [vmem:[%s1476_s4 + $0x74] sm:$0xf0]  ;;  %v1004_v59 = vor.u32 %v1145_v51, %v1001_v52  ;;  %v1063_v61 = vld [vmem:[%s1476_s4 + $0x128] sm:$0xf] }
  0x81   : > { %729 = vmatpush.bf16.msra.mxu2 %v932_v12  ;;  %v1100_v60 = vor.u32 %v1169_v53, %v1097_v54  ;;  %v1163_v62 = vld [vmem:[%s1476_s4 + $0x134] sm:$0xf0]  ;;  %v1141_v63 = vld [vmem:[%s1476_s4 + $0x8c] sm:$0xf]  ;;  %v985_v0 = vld [vmem:[%s1476_s4 + $0x98] sm:$0xf0]  ;;  %v968_v3 = vor.u32 %v1139_v58, %v967_v57 }
  0x82   : > { %v1165_v1 = vld [vmem:[%s1476_s4 + $0x14c] sm:$0xf]  ;;  %v1081_v2 = vld [vmem:[%s1476_s4 + $0x158] sm:$0xf0]  ;;  %v1064_v4 = vor.u32 %v1163_v62, %v1063_v61  ;;  %v951_v5 = vld [vmem:[%s1476_s4 + $0x48] sm:$0xf]  ;;  %v988_v7 = vor.u32 %v1141_v63, %v985_v0  ;;  %v814_v61 = vlaneseq }
  0x83   : > { %1118 = vmatmul.msk.bf16.vlgmr.msra.gmra.mxu3 %vm680_vm1, %v1550_v24  ;;  %1117 = vmatmul.msk.bf16.vlgmr.msra.gmra.mxu1 %vm680_vm1, %v1550_v24  ;;  %v1135_v6 = vld [vmem:[%s1476_s4 + $0x54] sm:$0xf0]  ;;  %v1084_v8 = vor.u32 %v1165_v1, %v1081_v2  ;;  %v1047_v9 = vld [vmem:[%s1476_s4 + $0x108] sm:$0xf]  ;;  %v1137_v11 = vld [vmem:[%s1476_s4 + $0x6c] sm:$0xf] }
  0x84   : > { %749 = vmatpush.bf16.msrb.mxu1 %v1032_v16  ;;  %764 = vmatpush.bf16.msrb.mxu3 %v692_v21  ;;  %v1159_v10 = vld [vmem:[%s1476_s4 + $0x114] sm:$0xf0]  ;;  %v969_v12 = vld [vmem:[%s1476_s4 + $0x78] sm:$0xf0]  ;;  %v1161_v13 = vld [vmem:[%s1476_s4 + $0x12c] sm:$0xf]  ;;  %v952_v15 = vor.u32 %v1135_v6, %v951_v5 }
  0x85   : > { %704 = vmatpush.bf16.msra.mxu0 %v912_v28  ;;  %730 = vmatpush.bf16.msra.mxu2 %v916_v29  ;;  %v1065_v14 = vld [vmem:[%s1476_s4 + $0x138] sm:$0xf0]  ;;  %v1048_v16 = vor.u32 %v1159_v10, %v1047_v9  ;;  %v972_v17 = vor.u32 %v1137_v11, %v969_v12  ;;  %v935_v19 = vld [vmem:[%s1476_s4 + $0x28] sm:$0xf]  ;;  %v1131_v20 = vld [vmem:[%s1476_s4 + $0x34] sm:$0xf0] }
  0x86   : > { %v1068_v18 = vor.u32 %v1161_v13, %v1065_v14  ;;  %v1133_v21 = vld [vmem:[%s1476_s4 + $0x4c] sm:$0xf]  ;;  %v953_v22 = vld [vmem:[%s1476_s4 + $0x58] sm:$0xf0]  ;;  %v936_v26 = vor.u32 %v1131_v20, %v935_v19  ;;  %v919_v29 = vld [vmem:[%s1476_s4 + $0x8] sm:$0xf] }
  0x87   : > { %v1157_v23 = vld [vmem:[%s1476_s4 + $0x10c] sm:$0xf]  ;;  %v1049_v25 = vld [vmem:[%s1476_s4 + $0x118] sm:$0xf0]  ;;  %v956_v27 = vor.u32 %v1133_v21, %v953_v22  ;;  %p333_p4 = scmp.lt.s32.totalorder %s908_s7, 11  ;;  %vm809_vm2 = vcmask 1042434  }
  0x88   : > { %750 = vmatpush.bf16.msrb.mxu1 %v1016_v30  ;;  %765 = vmatpush.bf16.msrb.mxu3 %v1112_v31  ;;  %v1052_v28 = vor.u32 %v1157_v23, %v1049_v25  ;;  %v1127_v30 = vld [vmem:[%s1476_s4 + $0x14] sm:$0xf0]  ;;  %v1129_v31 = vld [vmem:[%s1476_s4 + $0x2c] sm:$0xf]  ;;  %v921_v36 = vld [vmem:[%s1476_s4 + $0x18] sm:$0xf0] }
  0x89   : > { %775 = vmatpush.bf16.msrb.mxu0 %v1036_v35  ;;  %790 = vmatpush.bf16.msrb.mxu2 %v695_v32  ;;  %v937_v32 = vld [vmem:[%s1476_s4 + $0x38] sm:$0xf0]  ;;  %v920_v33 = vor.u32 %v1127_v30, %v919_v29  ;;  %v1125_v35 = vld [vmem:[%s1476_s4 + $0xc] sm:$0xf]  ;;  %s1644_s7 = smov (!%p333_p4, %s908_s7), 11  ;;  %vm811_vm3 = vcmask 1041408  }
  0x8a   : > { %731 = vmatmul.bf16.vlgmr.msra.gmra.mxu2 %v1564_v39  ;;  %705 = vmatmul.bf16.vlgmr.msra.gmra.mxu0 %v1564_v39  ;;  %v940_v34 = vor.u32 %v1129_v31, %v937_v32  ;;  %v924_v37 = vor.u32 %v1125_v35, %v921_v36  ;;  %s335_s8 = scalar_lea.vmem %s1636_s3, %s1644_s7  ;;  %vm816_vm4 = vcmp.lt.s32.totalorder %v814_v61, 512 }
  0x8c   : > { %751 = vmatpush.bf16.msrb.mxu1 %v1000_v43  ;;  %766 = vmatpush.bf16.msrb.mxu3 %v1096_v44 }
  0x8d   : > { %776 = vmatpush.bf16.msrb.mxu0 %v1020_v47  ;;  %791 = vmatpush.bf16.msrb.mxu2 %v1116_v48  ;;  %v400_v47 = vld [vmem:[%s1478_s6] sm:$0xf] }
  0x8e   : > { %v673_v48 = vperm.slane %v400_v47, 1  ;;  %v674_v49 = vperm.slane %v400_v47, 2  ;;  %v672_v50 = vperm.slane %v400_v47, 0 }
  0x90   : > { %752 = vmatpush.bf16.msrb.mxu1 %v984_v55  ;;  %767 = vmatpush.bf16.msrb.mxu3 %v1080_v56 }
  0x91   : > { %777 = vmatpush.bf16.msrb.mxu0 %v1004_v59  ;;  %792 = vmatpush.bf16.msrb.mxu2 %v1100_v60 }
  0x94   : > { %753 = vmatpush.bf16.msrb.mxu1 %v968_v3  ;;  %768 = vmatpush.bf16.msrb.mxu3 %v1064_v4 }
  0x95   : > { %778 = vmatpush.bf16.msrb.mxu0 %v988_v7  ;;  %793 = vmatpush.bf16.msrb.mxu2 %v1084_v8 }
  0x98   : > { %754 = vmatpush.bf16.msrb.mxu1 %v952_v15  ;;  %769 = vmatpush.bf16.msrb.mxu3 %v1048_v16 }
  0x99   : > { %779 = vmatpush.bf16.msrb.mxu0 %v972_v17  ;;  %794 = vmatpush.bf16.msrb.mxu2 %v1068_v18 }
  0x9b   : > { %1119 = vmatmul.msk.bf16.vlgmr.msrb.gmra.mxu3 %vm680_vm1, %v1550_v24 }
  0x9c   : > { %755 = vmatpush.bf16.msrb.mxu1 %v936_v26 }
  0x9d   : > { %780 = vmatpush.bf16.msrb.mxu0 %v956_v27  ;;  %795 = vmatpush.bf16.msrb.mxu2 %v1052_v28 }
  0xa0   : > { %756 = vmatpush.bf16.msrb.mxu1 %v920_v33  ;;  %1120 = vmatmul.msk.bf16.vlgmr.msrb.gmra.mxu2 %vm680_vm1, %v1550_v24 }
  0xa1   : > { %781 = vmatpush.bf16.msrb.mxu0 %v940_v34 }
  0xa3   : > { %757 = vmatmul.bf16.vlgmr.msrb.gmra.mxu1 %v1564_v39 }
  0xa5   : > { %782 = vmatpush.bf16.msrb.mxu0 %v924_v37 }
  0xa8   : > { %783 = vmatmul.bf16.vlgmr.msrb.gmra.mxu0 %v1564_v39  ;;  %v675_v39 = vperm.slane %v400_v47, 3 }
 0x100   : > { %v719_v38 = vpop.f32.mrf.mxu1 }
 0x106   : > { %v745_v41 = vpop.f32.mrf.mxu3 }
 0x107   : > { %v706_v40 = vpop.f32.mrf.mxu0 }
 0x108   : > { %v721_v42 = vpop.f32.mrf.mxu1  ;;  %v707_v55 = vadd.f32 %v706_v40, %v672_v50 }
 0x10a   : > { %v720_v62 = vadd.f32 %v719_v38, %v707_v55 }
 0x10d   : > { %v732_v43 = vpop.f32.mrf.mxu2 }
 0x10e   : > { %v747_v45 = vpop.f32.mrf.mxu3  ;;  %v733_v51 = vadd.f32 %v732_v43, %v673_v48 }
 0x10f   : > { %v708_v44 = vpop.f32.mrf.mxu0 }
 0x110   : > { %v746_v56 = vadd.f32 %v745_v41, %v733_v51 }
 0x112   : > { %v805_v63 = vrot.slane %v746_v56, 7 }
 0x114   : > { %v808_v5 = vsel %vm684_vm0, %v720_v62, %v805_v63 }
 0x115   : > { %v734_v46 = vpop.f32.mrf.mxu2 }
 0x11e   : > { %v771_v24 = vpop.f32.mrf.mxu3 }
 0x120   : > { %v758_v52 = vpop.f32.mrf.mxu1 }
 0x121   : > { %v759_v53 = vadd.f32 %v758_v52, %v674_v49 }
 0x123   : > { %v797_v54 = vpop.f32.mrf.mxu2  ;;  %v772_v57 = vadd.f32 %v771_v24, %v759_v53 }
 0x125   : > { %v784_v58 = vpop.f32.mrf.mxu0  ;;  %v806_v0 = vrot.slane %v772_v57, 6 }
 0x126   : > { %v785_v59 = vadd.f32 %v784_v58, %v675_v39  ;;  %v773_v60 = vpop.f32.mrf.mxu3 }
 0x128   : > { %v798_v1 = vadd.f32 %v797_v54, %v785_v59  ;;  %v760_v2 = vpop.f32.mrf.mxu1 }
 0x12a   : > { %v807_v3 = vrot.slane %v798_v1, 5 }
 0x12b   : > { %v799_v4 = vpop.f32.mrf.mxu2 }
 0x12c   : > { %v810_v6 = vsel %vm809_vm2, %v806_v0, %v807_v3 }
 0x12d   : > { %v812_v7 = vsel %vm811_vm3, %v808_v5, %v810_v6  ;;  %v786_v8 = vpop.f32.mrf.mxu0 }
 0x12e   : > { %818 = vst.msk [vmem:[%s335_s8] sm:$0xf] %vm816_vm4, %v812_v7 }
 0x12f PF: > { %p13_p5 = scmp.ge.s32.totalorder %s1316_s17, 5   ;;  %s1639_s12 = smov %s1266_s13 }
 0x130   : > { %s1640_s13 = smov %s1270_s14  ;;  %s1641_s14 = smov %s1326_s20 }
 0x131   : > { %s1642_s15 = smov %s1316_s17  ;;  %15 = sbr.rel (!%p13_p5) target bundleno = 3 (0x3), region = 103 }
 0x136   :  { %839 = vsyncpa [#allocation4], 1 }
 0x137   :  { %841 = vsyncpa [#allocation4 + $0x1], 1 }

// kernel: broad_guided_filter.5
= control target key start
LH: loop header
LB: loop body
LE: loop exit
PB: predicated region body
PF: predicated region fallthrough
CT: control target
= control target key end

     0   :  { %vm90_vm0 = vcmask 130048   ;;  %v205_v22 = vlaneseq  ;;  %s962_s0 = inlined_call_operand.vmem [shape: f32[1,16,128], index: 0, kind: input, shape index: {}]   ;;  %s963_s1 = inlined_call_operand.vmem [shape: f32[1,16,128], index: 1, kind: input, shape index: {}]   ;;  %s964_s6 = inlined_call_operand.vmem [shape: f32[16,16], index: 6, kind: input, shape index: {}]   ;;  %s965_s4 = inlined_call_operand.vmem [shape: f32[1,512], index: 4, kind: input, shape index: {}]   ;;  %s966_s5 = inlined_call_operand.vmem [shape: f32[1,512], index: 5, kind: input, shape index: {}]   ;;  %s967_s3 = inlined_call_operand.vmem [shape: f32[16,128], index: 3, kind: input, shape index: {}]   ;;  %s968_s8 = inlined_call_operand.vmem [shape: f32[128,256], index: 8, kind: input, shape index: {}]   ;;  %s969_s7 = inlined_call_operand.vmem [shape: f32[32,16], index: 7, kind: input, shape index: {}]   ;;  %s970_s2 = inlined_call_operand.vmem [shape: f32[1,32,256], index: 2, kind: input, shape index: {}]   ;;  %s971_s9 = inlined_call_operand.vmem [shape: f32[1,32,256], index: 9, kind: output, shape index: {}]  }
   0x1   :  { %v33_v0 = vld [vmem:[%s962_s0 + $0x8] sm:$0xff]  ;;  %v32_v2 = vld [vmem:[%s962_s0] sm:$0xff]  ;;  %s599_s0 = smov 127  }
   0x2   :  { %v35_v1 = vld [vmem:[%s963_s1 + $0x8] sm:$0xff]  ;;  %111 = vmatpush.msra.mxu0 %v33_v0  ;;  %589 = vmatpush.msra.mxu2 %v33_v0  ;;  %v34_v3 = vld [vmem:[%s963_s1] sm:$0xff]  ;;  %v89_v7 = vmul.f32 %v33_v0, %v33_v0  ;;  %v88_v9 = vmul.f32 %v32_v2, %v32_v2  ;;  %s600_s1 = smov 1   ;;  %v703_v26 = vand.u32 127, %v205_v22 }
   0x3   :  { %v48_v4 = vld [vmem:[%s964_s6] sm:$0xff]  ;;  %591 = vmatpush.msra.mxu3 %v35_v1  ;;  %v49_v5 = vld [vmem:[%s964_s6 + $0x8] sm:$0xff]  ;;  %v87_v6 = vmul.f32 %v35_v1, %v33_v0  ;;  %134 = vmatpush.msra.mxu1 %v35_v1  ;;  %v86_v8 = vmul.f32 %v34_v3, %v32_v2 }
   0x4   :  { %112 = vmatpush.msra.mxu0 %v32_v2  ;;  %590 = vmatpush.msra.mxu2 %v32_v2  ;;  %v708_v27 = vld [vmem:[%s965_s4] sm:$0xf]  ;;  %vm207_vm1 = vcmp.lt.s32.totalorder %v703_v26, 1  ;;  %vm257_vm2 = vcmp.lt.s32.totalorder %v703_v26, 127  ;;  %v739_v49 = vld [vmem:[%s967_s3 + $0x8] sm:$0xff] }
   0x5   :  { %592 = vmatpush.msra.mxu3 %v34_v3  ;;  %573 = vmatmul.msk.f32.vlgmr.msra.gmra.mxu0 %vm90_vm0, %v48_v4  ;;  %v714_v28 = vld [vmem:[%s966_s5] sm:$0xf]  ;;  %v217_v29 = vperm.slane %v708_v27, 0  ;;  %v220_v31 = vperm.slane %v708_v27, 3 }
   0x6   :  { %574 = vmatmul.msk.f32.vlgmr.msra.gmra.mxu2 %vm90_vm0, %v49_v5  ;;  %576 = vmatmul.msk.f32.vlgmr.msra.gmra.mxu3 %vm90_vm0, %v49_v5  ;;  %v267_v30 = vperm.slane %v714_v28, 0  ;;  %v270_v45 = vperm.slane %v714_v28, 3  ;;  %v752_v0 = vld [vmem:[%s967_s3] sm:$0xff] }
   0x7   :  { %157 = vmatpush.msrb.mxu2 %v87_v6  ;;  %180 = vmatpush.msrb.mxu3 %v89_v7  ;;  %v268_v6 = vperm.slane %v714_v28, 1  ;;  %v219_v7 = vperm.slane %v708_v27, 2 }
   0x8   :  { %135 = vmatpush.msra.mxu1 %v34_v3 }
   0x9   :  { %158 = vmatpush.msrb.mxu2 %v86_v8  ;;  %181 = vmatpush.msrb.mxu3 %v88_v9 }
   0xa   :  { %575 = vmatmul.msk.f32.vlgmr.msra.gmra.mxu1 %vm90_vm0, %v48_v4 }
   0xe   :  { %577 = vmatmul.msk.f32.vlgmr.msrb.gmra.mxu2 %vm90_vm0, %v48_v4  ;;  %579 = vmatmul.msk.f32.vlgmr.msrb.gmra.mxu3 %vm90_vm0, %v48_v4  ;;  %v218_v4 = vperm.slane %v708_v27, 1 }
  0x16   :  { %578 = vmatmul.msk.f32.gmra.mxu2 %vm90_vm0, %v49_v5  ;;  %580 = vmatmul.msk.f32.gmra.mxu3 %vm90_vm0, %v49_v5 }
  0x82   :  { %v677_v10 = vpop.f32.mrf.mxu0 }
  0x83   :  { %241 = vrot.lane.b32.xlu2 %v677_v10, %s599_s0  ;;  %189 = vrot.lane.b32.xlu1 %v677_v10, %s600_s1 }
  0x87   :  { %v690_v17 = vpop.f32.mrf.mxu1 }
  0x89   :  { %v117_v11 = vpop.f32.mrf.mxu2  ;;  %v681_v12 = vpop.f32.mrf.mxu3 }
  0x8a   :  { %191 = vrot.lane.b32.xlu0 %v117_v11, %s600_s1 }
  0x8b   :  { %243 = vrot.lane.b32.xlu2 %v117_v11, %s599_s0 }
  0x91   :  { %v683_v13 = vpop.f32.mrf.mxu2  ;;  %v183_v14 = vpop.f32.mrf.mxu3 }
  0x92   :  { %247 = vrot.lane.b32.xlu0 %v681_v12, %s599_s0  ;;  %197 = vrot.lane.b32.xlu1 %v683_v13, %s600_s1 }
  0x93   :  { %201 = vrot.lane.b32.xlu2 %v183_v14, %s600_s1 }
  0x99   :  { %v687_v15 = vpop.f32.mrf.mxu2  ;;  %v186_v16 = vpop.f32.mrf.mxu3 }
  0x9a   :  { %203 = vrot.lane.b32.xlu0 %v186_v16, %s600_s1  ;;  %199 = vrot.lane.b32.xlu1 %v687_v15, %s600_s1 }
  0x9b   :  { %253 = vrot.lane.b32.xlu2 %v183_v14, %s599_s0 }
  0xa2   :  { %245 = vrot.lane.b32.xlu0 %v690_v17, %s599_s0  ;;  %255 = vrot.lane.b32.xlu1 %v186_v16, %s599_s0 }
  0xa3   :  { %251 = vrot.lane.b32.xlu2 %v687_v15, %s599_s0 }
  0xaa   :  { %195 = vrot.lane.b32.xlu0 %v681_v12, %s600_s1  ;;  %193 = vrot.lane.b32.xlu1 %v690_v17, %s600_s1 }
  0xb2   :  { %249 = vrot.lane.b32.xlu0 %v683_v13, %s599_s0 }
  0xdd   :  { %v242_v18 = vpop.permute.xlu2 %241 }
  0xe5   :  { %v244_v19 = vpop.permute.xlu2 %243 }
  0xed   :  { %v202_v25 = vpop.permute.xlu2 %201 }
  0xf5   :  { %v697_v20 = vpop.permute.xlu1 %189  ;;  %v254_v39 = vpop.permute.xlu2 %253 }
  0xf6   :  { %v214_v37 = vsel %vm207_vm1, %v202_v25, %v697_v20  ;;  %v264_v46 = vsel %vm257_vm2, %v254_v39, %v242_v18 }
  0xf7   :  { %v225_v44 = vmul.f32 %v217_v29, %v214_v37  ;;  %v278_v54 = vmul.f32 %v270_v45, %v264_v46 }
  0xf9   :  { %v233_v53 = vadd.f32 %v225_v44, %v677_v10 }
  0xfc   :  { %v699_v21 = vpop.permute.xlu0 %191 }
  0xfd   :  { %v252_v5 = vpop.permute.xlu2 %251 }
 0x104   :  { %v248_v23 = vpop.permute.xlu0 %247  ;;  %v701_v24 = vpop.permute.xlu1 %197 }
 0x105   :  { %v263_v34 = vsel %vm257_vm2, %v244_v19, %v248_v23  ;;  %v208_v35 = vsel %vm207_vm1, %v701_v24, %v202_v25  ;;  %v261_v8 = vsel %vm257_vm2, %v248_v23, %v252_v5 }
 0x106   :  { %v279_v41 = vmul.f32 %v267_v30, %v263_v34  ;;  %v228_v42 = vmul.f32 %v220_v31, %v208_v35  ;;  %v269_v34 = vperm.slane %v714_v28, 2 }
 0x108   :  { %v236_v50 = vadd.f32 %v228_v42, %v183_v14 }
 0x10a   :  { %v286_v61 = vadd.f32 %v278_v54, %v236_v50 }
 0x10c   :  { %v204_v32 = vpop.permute.xlu0 %203  ;;  %v200_v33 = vpop.permute.xlu1 %199  ;;  %v301_v9 = vmul.f32 %v286_v61, %v752_v0 }
 0x10d   :  { %v215_v36 = vsel %vm207_vm1, %v204_v32, %v699_v21  ;;  %v209_v40 = vsel %vm207_vm1, %v200_v33, %v204_v32 }
 0x10e   :  { %v229_v38 = vmul.f32 %v217_v29, %v215_v36  ;;  %v232_v48 = vmul.f32 %v220_v31, %v209_v40  ;;  %v280_v29 = vmul.f32 %v268_v6, %v261_v8 }
 0x110   :  { %v237_v43 = vadd.f32 %v229_v38, %v117_v11  ;;  %v240_v58 = vadd.f32 %v232_v48, %v186_v16 }
 0x112   :  { %v287_v47 = vadd.f32 %v279_v41, %v237_v43 }
 0x114   :  { %v246_v51 = vpop.permute.xlu0 %245  ;;  %v256_v52 = vpop.permute.xlu1 %255  ;;  %v747_v57 = vmul.f32 %v287_v47, %v739_v49 }
 0x115   :  { %v262_v55 = vsel %vm257_vm2, %v242_v18, %v246_v51  ;;  %v265_v56 = vsel %vm257_vm2, %v256_v52, %v244_v19  ;;  %v259_v36 = vsel %vm257_vm2, %v252_v5, %v256_v52 }
 0x116   :  { %v275_v59 = vmul.f32 %v267_v30, %v262_v55  ;;  %v282_v60 = vmul.f32 %v270_v45, %v265_v56  ;;  %v304_v2 = vmul.f32 %v747_v57, %v747_v57  ;;  %v281_v41 = vmul.f32 %v269_v34, %v259_v36  ;;  %v70_v36 = vld [vmem:[%s968_s8 + $0x80] sm:$0xff] }
 0x118   :  { %v283_v62 = vadd.f32 %v275_v59, %v233_v53  ;;  %v290_v63 = vadd.f32 %v282_v60, %v240_v58 }
 0x11a   :  { %v755_v1 = vmul.f32 %v283_v62, %v752_v0  ;;  %v302_v3 = vmul.f32 %v290_v63, %v739_v49 }
 0x11c   :  { %v303_v10 = vmul.f32 %v755_v1, %v755_v1  ;;  %v306_v11 = vsub.f32 %v302_v3, %v304_v2  ;;  %v196_v14 = vpop.permute.xlu0 %195  ;;  %v194_v16 = vpop.permute.xlu1 %193 }
 0x11d   :  { %v211_v18 = vsel %vm207_vm1, %v196_v14, %v200_v33  ;;  %v213_v19 = vsel %vm207_vm1, %v699_v21, %v196_v14  ;;  %v212_v23 = vsel %vm207_vm1, %v697_v20, %v194_v16  ;;  %v210_v21 = vsel %vm207_vm1, %v194_v16, %v701_v24 }
 0x11e   :  { %v305_v22 = vsub.f32 %v301_v9, %v303_v10  ;;  %v308_v25 = vadd.f32 1e-08, %v306_v11  ;;  %v230_v27 = vmul.f32 %v218_v4, %v213_v19  ;;  %v231_v31 = vmul.f32 %v219_v7, %v211_v18  ;;  %v84_v10 = vld [vmem:[%s968_s8 + $0xf0] sm:$0xff]  ;;  %v85_v11 = vld [vmem:[%s968_s8 + $0xf8] sm:$0xff]  ;;  %v50_v18 = vld [vmem:[%s969_s7] sm:$0xff] }
 0x11f   :  { %v226_v35 = vmul.f32 %v218_v4, %v212_v23  ;;  %v227_v38 = vmul.f32 %v219_v7, %v210_v21  ;;  %413 = vmatpush.msra.mxu2 %v84_v10  ;;  %v83_v19 = vld [vmem:[%s968_s8 + $0xe8] sm:$0xff]  ;;  %442 = vmatpush.msra.mxu3 %v85_v11  ;;  %v72_v21 = vld [vmem:[%s968_s8 + $0x90] sm:$0xff] }
 0x120   :  { %v307_v30 = vadd.f32 1e-08, %v305_v22  ;;  %595 = vrcp.f32 %v308_v25  ;;  %v238_v32 = vadd.f32 %v230_v27, %v681_v12  ;;  %v239_v37 = vadd.f32 %v231_v31, %v687_v15  ;;  %v80_v22 = vld [vmem:[%s968_s8 + $0xd0] sm:$0xff]  ;;  %v77_v31 = vld [vmem:[%s968_s8 + $0xb8] sm:$0xff] }
 0x121   :  { %v234_v42 = vadd.f32 %v226_v35, %v690_v17  ;;  %v235_v48 = vadd.f32 %v227_v38, %v683_v13  ;;  %v335_v53 = vand.u32 2147483648, %v308_v25  ;;  %vm329_vm4 = vweird.f32 %v308_v25  ;;  %443 = vmatpush.msra.mxu3 %v83_v19  ;;  %v73_v35 = vld [vmem:[%s968_s8 + $0x98] sm:$0xff] }
 0x122   :  { %597 = vrcp.f32 %v307_v30  ;;  %v288_v33 = vadd.f32 %v280_v29, %v238_v32  ;;  %v289_v47 = vadd.f32 %v281_v41, %v239_v37  ;;  %v318_v58 = vand.u32 2147483647, %v307_v30  ;;  %v78_v29 = vld [vmem:[%s968_s8 + $0xc0] sm:$0xff]  ;;  %v71_v37 = vld [vmem:[%s968_s8 + $0x88] sm:$0xff]  ;;  %v69_v38 = vld [vmem:[%s968_s8 + $0x78] sm:$0xff] }
 0x123   :  { %v320_v59 = vand.u32 2147483648, %v307_v30  ;;  %v336_v62 = vor.u32 1.1754944e-38, %v335_v53  ;;  %vm314_vm8 = vweird.f32 %v307_v30  ;;  %v74_v32 = vld [vmem:[%s968_s8 + $0xa0] sm:$0xff]  ;;  %v64_v41 = vld [vmem:[%s968_s8 + $0x50] sm:$0xff] }
 0x124   :  { %v250_v20 = vpop.permute.xlu0 %249  ;;  %v294_v24 = vmul.f32 %v288_v33, %v739_v49  ;;  %v296_v56 = vmul.f32 %v289_v47, %v739_v49  ;;  %vm319_vm10 = vcmp.eq.f32.partialorder %v318_v58, 8.507059e+37  ;;  %v75_v33 = vld [vmem:[%s968_s8 + $0xa8] sm:$0xff]  ;;  %v58_v47 = vld [vmem:[%s968_s8 + $0x20] sm:$0xff] }
 0x125   :  { %v258_v40 = vsel %vm257_vm2, %v250_v20, %v254_v39  ;;  %v260_v12 = vsel %vm257_vm2, %v246_v51, %v250_v20  ;;  %v333_v51 = vand.u32 2147483647, %v308_v25  ;;  %v321_v49 = vor.u32 1.1754944e-38, %v320_v59  ;;  %v68_v20 = vld [vmem:[%s968_s8 + $0x70] sm:$0xff]  ;;  %v36_v59 = vld [vmem:[%s970_s2] sm:$0xff] }
 0x126   :  { %v596_v28 = vpop.eup %595  ;;  %v276_v43 = vmul.f32 %v268_v6, %v260_v12  ;;  %v277_v44 = vmul.f32 %v269_v34, %v258_v40  ;;  %v298_v26 = vmul.f32 %v294_v24, %v747_v57  ;;  %v51_v34 = vld [vmem:[%s969_s7 + $0x8] sm:$0xff]  ;;  %v52_v40 = vld [vmem:[%s969_s7 + $0x10] sm:$0xff]  ;;  %v66_v12 = vld [vmem:[%s968_s8 + $0x60] sm:$0xff] }
 0x127   :  { %v325_v45 = vmul.f32 %v596_v28, %v308_v25  ;;  %vm330_vm3 = vweird.f32 %v596_v28  ;;  %vm334_vm7 = vcmp.eq.f32.partialorder %v333_v51, 8.507059e+37 }
 0x128   :  { %v598_v46 = vpop.eup %597  ;;  %v284_v15 = vadd.f32 %v276_v43, %v234_v42  ;;  %v285_v54 = vadd.f32 %v277_v44, %v235_v48  ;;  %vm331_vm6 = vmor %vm329_vm4, %vm330_vm3  ;;  %v300_v63 = vsub.f32 %v296_v56, %v298_v26  ;;  %v65_v42 = vld [vmem:[%s968_s8 + $0x58] sm:$0xff]  ;;  %v62_v43 = vld [vmem:[%s968_s8 + $0x40] sm:$0xff] }
 0x129   :  { %v326_v50 = vsub.f32 1.0, %v325_v45  ;;  %v310_v52 = vmul.f32 %v598_v46, %v307_v30  ;;  %vm315_vm5 = vweird.f32 %v598_v46  ;;  %v79_v30 = vld [vmem:[%s968_s8 + $0xc8] sm:$0xff]  ;;  %v60_v44 = vld [vmem:[%s968_s8 + $0x30] sm:$0xff]  ;;  %v53_v45 = vld [vmem:[%s969_s7 + $0x18] sm:$0xff] }
 0x12a   :  { %v293_v39 = vmul.f32 %v284_v15, %v752_v0  ;;  %v295_v3 = vmul.f32 %v285_v54, %v752_v0  ;;  %vm316_vm9 = vmor %vm314_vm8, %vm315_vm5  ;;  %v82_v0 = vld [vmem:[%s968_s8 + $0xe0] sm:$0xff]  ;;  %v59_v15 = vld [vmem:[%s968_s8 + $0x28] sm:$0xff] }
 0x12b   :  { %v327_v17 = vmul.f32 %v596_v28, %v326_v50  ;;  %v311_v55 = vsub.f32 1.0, %v310_v52  ;;  %414 = vmatpush.msra.mxu2 %v82_v0  ;;  %v56_v48 = vld [vmem:[%s968_s8 + $0x10] sm:$0xff]  ;;  %v57_v50 = vld [vmem:[%s968_s8 + $0x18] sm:$0xff]  ;;  %v54_v52 = vld [vmem:[%s968_s8] sm:$0xff] }
 0x12c   :  { %v297_v13 = vmul.f32 %v293_v39, %v755_v1 }
 0x12d   :  { %v328_v60 = vadd.f32 %v596_v28, %v327_v17  ;;  %v312_v61 = vmul.f32 %v598_v46, %v311_v55  ;;  %415 = vmatpush.msra.mxu2 %v80_v22 }
 0x12e   :  { %v299_v7 = vsub.f32 %v295_v3, %v297_v13 }
 0x12f   :  { %v332_v2 = vsel %vm331_vm6, %v596_v28, %v328_v60  ;;  %v313_v4 = vadd.f32 %v598_v46, %v312_v61  ;;  %416 = vmatpush.msra.mxu2 %v78_v29  ;;  %v67_v28 = vld [vmem:[%s968_s8 + $0x68] sm:$0xff] }
 0x130   :  { %v337_v5 = vsel %vm334_vm7, %v336_v62, %v332_v2  ;;  %v37_v60 = vld [vmem:[%s970_s2 + $0x8] sm:$0xff] }
 0x131   :  { %v338_v6 = vmul.f32 %v337_v5, %v300_v63  ;;  %v317_v8 = vsel %vm316_vm9, %v598_v46, %v313_v4  ;;  %v61_v46 = vld [vmem:[%s968_s8 + $0x38] sm:$0xff] }
 0x132   :  { %v322_v9 = vsel %vm319_vm10, %v321_v49, %v317_v8  ;;  %v39_v8 = vld [vmem:[%s970_s2 + $0x18] sm:$0xff] }
 0x133   :  { %369 = vmatpush.msrb.mxu0 %v338_v6  ;;  %v323_v14 = vmul.f32 %v322_v9, %v299_v7  ;;  %v340_v16 = vmul.f32 %v338_v6, %v747_v57  ;;  %v81_v57 = vld [vmem:[%s968_s8 + $0xd8] sm:$0xff]  ;;  %v38_v7 = vld [vmem:[%s970_s2 + $0x10] sm:$0xff] }
 0x134   :  { %444 = vmatpush.msra.mxu3 %v81_v57 }
 0x135   :  { %370 = vmatpush.msrb.mxu0 %v323_v14  ;;  %v342_v25 = vsub.f32 %v294_v24, %v340_v16  ;;  %v339_v27 = vmul.f32 %v323_v14, %v755_v1  ;;  %v76_v1 = vld [vmem:[%s968_s8 + $0xb0] sm:$0xff]  ;;  %v63_v24 = vld [vmem:[%s968_s8 + $0x48] sm:$0xff] }
 0x136   :  { %581 = vmatmul.msk.f32.vlgmr.msrb.gmra.mxu0 %vm90_vm0, %v50_v18  ;;  %445 = vmatpush.msra.mxu3 %v79_v30 }
 0x137   :  { %398 = vmatpush.msrb.mxu1 %v342_v25  ;;  %v341_v23 = vsub.f32 %v293_v39, %v339_v27  ;;  %471 = vmatpush.msra.mxu0 %v84_v10  ;;  %v55_v39 = vld [vmem:[%s968_s8 + $0x8] sm:$0xff] }
 0x138   :  { %417 = vmatpush.msra.mxu2 %v76_v1  ;;  %446 = vmatpush.msra.mxu3 %v77_v31 }
 0x139   :  { %399 = vmatpush.msrb.mxu1 %v341_v23  ;;  %472 = vmatpush.msra.mxu0 %v82_v0  ;;  %v41_v23 = vld [vmem:[%s970_s2 + $0x28] sm:$0xff] }
 0x13a   :  { %585 = vmatmul.msk.f32.vlgmr.msrb.gmra.mxu1 %vm90_vm0, %v50_v18  ;;  %418 = vmatpush.msra.mxu2 %v74_v32 }
 0x13b   :  { %500 = vmatpush.msra.mxu1 %v85_v11  ;;  %447 = vmatpush.msra.mxu3 %v75_v33 }
 0x13c   :  { %473 = vmatpush.msra.mxu0 %v80_v22  ;;  %419 = vmatpush.msra.mxu2 %v72_v21 }
 0x13d   :  { %501 = vmatpush.msra.mxu1 %v83_v19  ;;  %448 = vmatpush.msra.mxu3 %v73_v35 }
 0x13e   :  { %582 = vmatmul.msk.f32.gmra.mxu0 %vm90_vm0, %v51_v34  ;;  %420 = vmatpush.msra.mxu2 %v70_v36 }
 0x13f   :  { %502 = vmatpush.msra.mxu1 %v81_v57  ;;  %474 = vmatpush.msra.mxu0 %v78_v29  ;;  %v40_v29 = vld [vmem:[%s970_s2 + $0x20] sm:$0xff] }
 0x140   :  { %449 = vmatpush.msra.mxu3 %v71_v37  ;;  %421 = vmatpush.msra.mxu2 %v68_v20 }
 0x141   :  { %503 = vmatpush.msra.mxu1 %v79_v30  ;;  %475 = vmatpush.msra.mxu0 %v76_v1 }
 0x142   :  { %586 = vmatmul.msk.f32.gmra.mxu1 %vm90_vm0, %v51_v34  ;;  %450 = vmatpush.msra.mxu3 %v69_v38 }
 0x143   :  { %504 = vmatpush.msra.mxu1 %v77_v31  ;;  %476 = vmatpush.msra.mxu0 %v74_v32 }
 0x144   :  { %422 = vmatpush.msra.mxu2 %v66_v12  ;;  %451 = vmatpush.msra.mxu3 %v67_v28 }
 0x145   :  { %505 = vmatpush.msra.mxu1 %v75_v33  ;;  %477 = vmatpush.msra.mxu0 %v72_v21 }
 0x146   :  { %583 = vmatmul.msk.f32.gmra.mxu0 %vm90_vm0, %v52_v40  ;;  %423 = vmatpush.msra.mxu2 %v64_v41 }
 0x147   :  { %506 = vmatpush.msra.mxu1 %v73_v35  ;;  %452 = vmatpush.msra.mxu3 %v65_v42 }
 0x148   :  { %478 = vmatpush.msra.mxu0 %v70_v36  ;;  %424 = vmatpush.msra.mxu2 %v62_v43 }
 0x149   :  { %507 = vmatpush.msra.mxu1 %v71_v37  ;;  %453 = vmatpush.msra.mxu3 %v63_v24 }
 0x14a   :  { %587 = vmatmul.msk.f32.gmra.mxu1 %vm90_vm0, %v52_v40  ;;  %479 = vmatpush.msra.mxu0 %v68_v20  ;;  %v42_v40 = vld [vmem:[%s970_s2 + $0x30] sm:$0xff] }
 0x14b   :  { %508 = vmatpush.msra.mxu1 %v69_v38  ;;  %425 = vmatpush.msra.mxu2 %v60_v44 }
 0x14c   :  { %454 = vmatpush.msra.mxu3 %v61_v46  ;;  %480 = vmatpush.msra.mxu0 %v66_v12  ;;  %v43_v12 = vld [vmem:[%s970_s2 + $0x38] sm:$0xff] }
 0x14d   :  { %509 = vmatpush.msra.mxu1 %v67_v28  ;;  %426 = vmatpush.msra.mxu2 %v58_v47 }
 0x14e   :  { %584 = vmatmul.msk.f32.gmra.mxu0 %vm90_vm0, %v53_v45  ;;  %455 = vmatpush.msra.mxu3 %v59_v15 }
 0x14f   :  { %481 = vmatpush.msra.mxu0 %v64_v41  ;;  %510 = vmatpush.msra.mxu1 %v65_v42 }
 0x150   :  { %427 = vmatpush.msra.mxu2 %v56_v48  ;;  %456 = vmatpush.msra.mxu3 %v57_v50 }
 0x151   :  { %482 = vmatpush.msra.mxu0 %v62_v43  ;;  %511 = vmatpush.msra.mxu1 %v63_v24 }
 0x152   :  { %588 = vmatmul.msk.f32.gmra.mxu1 %vm90_vm0, %v53_v45  ;;  %428 = vmatpush.msra.mxu2 %v54_v52 }
 0x153   :  { %483 = vmatpush.msra.mxu0 %v60_v44  ;;  %512 = vmatpush.msra.mxu1 %v61_v46 }
 0x154   :  { %457 = vmatpush.msra.mxu3 %v55_v39 }
 0x155   :  { %484 = vmatpush.msra.mxu0 %v58_v47  ;;  %513 = vmatpush.msra.mxu1 %v59_v15 }
 0x157   :  { %485 = vmatpush.msra.mxu0 %v56_v48  ;;  %514 = vmatpush.msra.mxu1 %v57_v50 }
 0x159   :  { %486 = vmatpush.msra.mxu0 %v54_v52  ;;  %515 = vmatpush.msra.mxu1 %v55_v39 }
 0x1b3   :  { %v372_v26 = vpop.f32.mrf.mxu0 }
 0x1b4   :  { %429 = vmatmul.f32.vlgmr.msra.gmra.mxu2 %v372_v26  ;;  %458 = vmatmul.f32.vlgmr.msra.gmra.mxu3 %v372_v26 }
 0x1b7   :  { %v401_v51 = vpop.f32.mrf.mxu1 }
 0x1b8   :  { %487 = vmatmul.f32.vlgmr.msra.gmra.mxu0 %v401_v51  ;;  %516 = vmatmul.f32.vlgmr.msra.gmra.mxu1 %v401_v51 }
 0x1bb   :  { %v375_v53 = vpop.f32.mrf.mxu0 }
 0x1bc   :  { %432 = vmatmul.f32.gmra.mxu2 %v375_v53  ;;  %461 = vmatmul.f32.gmra.mxu3 %v375_v53 }
 0x1bf   :  { %v404_v54 = vpop.f32.mrf.mxu1 }
 0x1c0   :  { %490 = vmatmul.f32.gmra.mxu0 %v404_v54  ;;  %519 = vmatmul.f32.gmra.mxu1 %v404_v54 }
 0x1c3   :  { %v378_v17 = vpop.f32.mrf.mxu0 }
 0x1c4   :  { %435 = vmatmul.f32.gmra.mxu2 %v378_v17  ;;  %464 = vmatmul.f32.gmra.mxu3 %v378_v17 }
 0x1c7   :  { %v407_v55 = vpop.f32.mrf.mxu1 }
 0x1c8   :  { %493 = vmatmul.f32.gmra.mxu0 %v407_v55  ;;  %522 = vmatmul.f32.gmra.mxu1 %v407_v55 }
 0x1cb   :  { %v381_v56 = vpop.f32.mrf.mxu0 }
 0x1cc   :  { %438 = vmatmul.f32.gmra.mxu2 %v381_v56  ;;  %467 = vmatmul.f32.gmra.mxu3 %v381_v56 }
 0x1cf   :  { %v410_v58 = vpop.f32.mrf.mxu1 }
 0x1d0   :  { %496 = vmatmul.f32.gmra.mxu0 %v410_v58  ;;  %525 = vmatmul.f32.gmra.mxu1 %v410_v58 }
 0x235   :  { %v488_v13 = vpop.f32.mrf.mxu0  ;;  %v517_v61 = vpop.f32.mrf.mxu1 }
 0x237   :  { %v430_v62 = vpop.f32.mrf.mxu2  ;;  %v459_v63 = vpop.f32.mrf.mxu3 }
 0x238   :  { %v529_v2 = vmul.f32 %v430_v62, %v36_v59  ;;  %v530_v3 = vmul.f32 %v459_v63, %v37_v60 }
 0x23a   :  { %v537_v4 = vadd.f32 %v529_v2, %v488_v13  ;;  %v538_v5 = vadd.f32 %v530_v3, %v517_v61 }
 0x23c   :  { %v545_v49 = vmax.f32 %v537_v4, 0.0  ;;  %v546_v6 = vmax.f32 %v538_v5, 0.0 }
 0x23d   :  { %v491_v9 = vpop.f32.mrf.mxu0  ;;  %v520_v10 = vpop.f32.mrf.mxu1 }
 0x23e   :  { %v553_v11 = vmin.f32 %v545_v49, 1.0  ;;  %v554_v0 = vmin.f32 %v546_v6, 1.0 }
 0x23f   :  { %v433_v14 = vpop.f32.mrf.mxu2  ;;  %v462_v16 = vpop.f32.mrf.mxu3 }
 0x240   :  { %561 = vst [vmem:[%s971_s9] sm:$0xff] %v553_v11  ;;  %v531_v18 = vmul.f32 %v433_v14, %v38_v7  ;;  %v532_v19 = vmul.f32 %v462_v16, %v39_v8 }
 0x241   :  { %562 = vst [vmem:[%s971_s9 + $0x8] sm:$0xff] %v554_v0 }
 0x242   :  { %v539_v22 = vadd.f32 %v531_v18, %v491_v9  ;;  %v540_v25 = vadd.f32 %v532_v19, %v520_v10 }
 0x244   :  { %v547_v27 = vmax.f32 %v539_v22, 0.0  ;;  %v548_v57 = vmax.f32 %v540_v25, 0.0 }
 0x245   :  { %v494_v30 = vpop.f32.mrf.mxu0  ;;  %v523_v1 = vpop.f32.mrf.mxu1 }
 0x246   :  { %v555_v31 = vmin.f32 %v547_v27, 1.0  ;;  %v556_v32 = vmin.f32 %v548_v57, 1.0 }
 0x247   :  { %v436_v34 = vpop.f32.mrf.mxu2  ;;  %v465_v33 = vpop.f32.mrf.mxu3 }
 0x248   :  { %563 = vst [vmem:[%s971_s9 + $0x10] sm:$0xff] %v555_v31  ;;  %v533_v21 = vmul.f32 %v436_v34, %v40_v29  ;;  %v534_v35 = vmul.f32 %v465_v33, %v41_v23 }
 0x249   :  { %564 = vst [vmem:[%s971_s9 + $0x18] sm:$0xff] %v556_v32 }
 0x24a   :  { %v541_v36 = vadd.f32 %v533_v21, %v494_v30  ;;  %v542_v37 = vadd.f32 %v534_v35, %v523_v1 }
 0x24c   :  { %v549_v20 = vmax.f32 %v541_v36, 0.0  ;;  %v550_v38 = vmax.f32 %v542_v37, 0.0 }
 0x24d   :  { %v497_v42 = vpop.f32.mrf.mxu0  ;;  %v526_v43 = vpop.f32.mrf.mxu1 }
 0x24e   :  { %v557_v28 = vmin.f32 %v549_v20, 1.0  ;;  %v558_v41 = vmin.f32 %v550_v38, 1.0 }
 0x24f   :  { %v439_v24 = vpop.f32.mrf.mxu2  ;;  %v468_v44 = vpop.f32.mrf.mxu3 }
 0x250   :  { %565 = vst [vmem:[%s971_s9 + $0x20] sm:$0xff] %v557_v28  ;;  %v535_v45 = vmul.f32 %v439_v24, %v42_v40  ;;  %v536_v46 = vmul.f32 %v468_v44, %v43_v12 }
 0x251   :  { %566 = vst [vmem:[%s971_s9 + $0x28] sm:$0xff] %v558_v41 }
 0x252   :  { %v543_v47 = vadd.f32 %v535_v45, %v497_v42  ;;  %v544_v15 = vadd.f32 %v536_v46, %v526_v43 }
 0x254   :  { %v551_v48 = vmax.f32 %v543_v47, 0.0  ;;  %v552_v50 = vmax.f32 %v544_v15, 0.0 }
 0x256   :  { %v559_v52 = vmin.f32 %v551_v48, 1.0  ;;  %v560_v39 = vmin.f32 %v552_v50, 1.0 }
 0x258   :  { %567 = vst [vmem:[%s971_s9 + $0x30] sm:$0xff] %v559_v52 }
 0x259   :  { %568 = vst [vmem:[%s971_s9 + $0x38] sm:$0xff] %v560_v39 }

</bundles_post_ra>
